<compile_context>
chip_gen: v7x
topology: tpu7x:2x2x1
jax: 0.10.0
libtpu: 0.0.40
codegen_flags: <defaults>
</compile_context>

<pallas_src>
import numpy as np
import jax
import jax.numpy as jnp
from jax.experimental import pallas as pl
from jax.experimental.pallas import tpu as pltpu

R = 16  # points interleaved per 128-lane row (16 * (4+C=8) output cols = 128 lanes)


def _coloring_kernel(in_ref, wc_ref, wx_ref, bd_ref, means_ref, nhiv_ref, out_ref):
    # in_ref:    (bm, R*5)        16 points interleaved per row (lane-dense)
    # wc_ref:    (R*5, R*OC)      one-hot coords pass-through (block one-hot)
    # wx_ref:    (R*5, R*G)       one-hot x-value replication
    # bd_ref:    (R*G, R*OC)      block-diagonal copies of `colors` (cols 4..)
    # means_ref: (1, R*G)         means[g] at lane j*G+g
    # nhiv_ref:  (1, R*G)         -0.5/std[g]^2 at lane j*G+g
    # out_ref:   (bm, R*OC)       16 points x (4+C) output cols per row
    hi = jax.lax.Precision.HIGHEST
    xin = in_ref[...].astype(jnp.float32)                       # (bm, 80)

    # De-interleave on the (idle) MXU: coords pass-through and x replication.
    coords = jnp.dot(xin, wc_ref[...], precision=hi,
                     preferred_element_type=jnp.float32)        # (bm, R*OC)
    x_rep = jnp.dot(xin, wx_ref[...], precision=hi,
                    preferred_element_type=jnp.float32)         # (bm, R*G)

    # Gaussian transfer function: exp(-0.5*((x - m)/s)^2)  (VPU + EUP, lane-dense)
    d = x_rep - means_ref[...]
    gauss = jnp.exp(d * d * nhiv_ref[...])                      # (bm, R*G)

    # Per-point color sum via the block-diagonal colors matrix (MXU, lane-dense).
    # TODO(synk): on v7x, if the bundle dump shows the MXU-push slot binding
    # before HBM, swap this for a VPU broadcast-multiply + XLU sublane reduce.
    colsum = jnp.dot(gauss, bd_ref[...], precision=hi,
                     preferred_element_type=jnp.float32)        # (bm, R*OC)

    out_ref[...] = (coords + colsum).astype(out_ref.dtype)


def gaussian_tf_coloring(points, means, std_devs, colors, *, tile_points=32768):
    N, F = points.shape
    assert F == 5, "points must have 5 feature columns (4 coords + 1 x-value)"
    G, C = colors.shape
    assert means.shape == (G,) and std_devs.shape == (G,)
    OC = 4 + C
    assert tile_points % (8 * R) == 0, "tile_points must be a multiple of 128"

    # --- wrapper layout plumbing: contiguous reshapes only (free bitcasts). ---
    N_pad = ((N + R - 1) // R) * R
    pts = points if N_pad == N else jnp.pad(points, ((0, N_pad - N), (0, 0)))
    rows = N_pad // R
    in_il = pts.reshape(rows, R * F)                             # (rows, 80)

    # --- small constant operands (built once; re-used across grid steps). ---
    wc = np.zeros((R * F, R * OC), np.float32)                   # coords pass-through
    wx = np.zeros((R * F, R * G), np.float32)                    # x replication
    for j in range(R):
        for c in range(4):
            wc[j * F + c, j * OC + c] = 1.0
        wx[j * F + 4, j * G:(j + 1) * G] = 1.0
    wc = jnp.asarray(wc)
    wx = jnp.asarray(wx)
    colors_pad = jnp.zeros((G, OC), jnp.float32).at[:, 4:].set(colors.astype(jnp.float32))
    bd = jnp.kron(jnp.eye(R, dtype=jnp.float32), colors_pad)     # (R*G, R*OC) block-diag
    means_il = jnp.tile(means.astype(jnp.float32), R).reshape(1, R * G)
    nhiv_il = jnp.tile(-0.5 / (std_devs.astype(jnp.float32) ** 2), R).reshape(1, R * G)

    # --- tiling: big tiles, ragged last block, grid >= 2 when worth it (v7x). ---
    bm = tile_points // R
    if rows >= 1024:                       # enough work -> let both TCs (v7x) share
        half = (((rows + 1) // 2) + 7) // 8 * 8
        bm = min(bm, half)
    bm = min(bm, (rows // 8) * 8) if rows >= 8 else rows
    grid = (pl.cdiv(rows, bm),)

    out_il = pl.pallas_call(
        _coloring_kernel,
        out_shape=jax.ShapeDtypeStruct((rows, R * OC), points.dtype),
        grid=grid,
        in_specs=[
            pl.BlockSpec((bm, R * F), lambda i: (i, 0)),      # interleaved points
            pl.BlockSpec((R * F, R * OC), lambda i: (0, 0)),  # Wc  (constant block)
            pl.BlockSpec((R * F, R * G), lambda i: (0, 0)),   # Wx  (constant block)
            pl.BlockSpec((R * G, R * OC), lambda i: (0, 0)),  # colors block-diag
            pl.BlockSpec((1, R * G), lambda i: (0, 0)),       # means
            pl.BlockSpec((1, R * G), lambda i: (0, 0)),       # -0.5/std^2
        ],
        out_specs=pl.BlockSpec((bm, R * OC), lambda i: (i, 0)),
        compiler_params=pltpu.CompilerParams(
            dimension_semantics=("parallel",)),
    )(in_il, wc, wx, bd, means_il, nhiv_il)

    out = out_il.reshape(N_pad, OC)                              # free bitcast
    return out if N_pad == N else out[:N]


def reference(points, means, std_devs, colors):
    coords = points[:, :4]
    x = points[:, 4][:, None]
    gaussians = jnp.exp(-0.5 * ((x - means) / std_devs) ** 2)
    final_colors = (gaussians[:, :, None] * colors).sum(axis=1)
    return jnp.concatenate([coords, final_colors], axis=1)


if __name__ == "__main__":
    key = jax.random.PRNGKey(0)
    k_pts, k_means, k_colors, k_pts2 = jax.random.split(key, 4)

    G, C = 8, 4
    means = jnp.linspace(-1.0, 1.0, G, dtype=jnp.float32) \
        + 0.01 * jax.random.normal(k_means, (G,), dtype=jnp.float32)
    std_devs = jnp.full((G,), 0.5, dtype=jnp.float32)
    colors = jax.random.uniform(k_colors, (G, C), dtype=jnp.float32)

    # Case 1: N NOT a multiple of 16 -> exercises the pad/slice fallback and a
    # ragged last grid block (tile_points=2048 keeps a multi-step grid).
    N1 = 3000
    pts1 = jax.random.normal(k_pts, (N1, 5), dtype=jnp.float32)
    out1 = jax.block_until_ready(
        gaussian_tf_coloring(pts1, means, std_devs, colors, tile_points=2048))
    ref1 = reference(pts1, means, std_devs, colors)
    assert out1.shape == (N1, 4 + C)
    assert jnp.allclose(out1, ref1, atol=1e-5, rtol=1e-5), "mismatch (ragged N)"

    # Case 2: N a multiple of 16 -> fully zero-copy wrapper (reshape-only).
    N2 = 4096
    pts2 = jax.random.normal(k_pts2, (N2, 5), dtype=jnp.float32)
    out2 = jax.block_until_ready(
        gaussian_tf_coloring(pts2, means, std_devs, colors, tile_points=2048))
    ref2 = reference(pts2, means, std_devs, colors)
    assert out2.shape == (N2, 4 + C)
    assert jnp.allclose(out2, ref2, atol=1e-5, rtol=1e-5), "mismatch (aligned N)"

    print("KERNEL_OK")
</pallas_src>

<mosaic_0001>
module attributes {stable_mosaic.version = 11 : i64} {
  func.func @_coloring_kernel(%arg0: i32, %arg1: memref<128x80xf32, #tpu.memory_space<vmem>>, %arg2: memref<80x128xf32, #tpu.memory_space<vmem>>, %arg3: memref<80x128xf32, #tpu.memory_space<vmem>>, %arg4: memref<128x128xf32, #tpu.memory_space<vmem>>, %arg5: memref<1x128xf32, #tpu.memory_space<vmem>>, %arg6: memref<1x128xf32, #tpu.memory_space<vmem>>, %arg7: memref<128x128xf32, #tpu.memory_space<vmem>>) attributes {dimension_semantics = [#tpu.dimension_semantics<parallel>], iteration_bounds = array<i64: 2>, scalar_prefetch = 0 : i64, scratch_operands = 0 : i64, tpu.core_type = #tpu.core_type<tc>, window_params = [{transform_indices = @transform_0, window_bounds = array<i64: 128, 80>}, {pipeline_mode = #tpu.pipeline_mode<synchronous>, transform_indices = @transform_1, window_bounds = array<i64: 80, 128>}, {pipeline_mode = #tpu.pipeline_mode<synchronous>, transform_indices = @transform_2, window_bounds = array<i64: 80, 128>}, {pipeline_mode = #tpu.pipeline_mode<synchronous>, transform_indices = @transform_3, window_bounds = array<i64: 128, 128>}, {pipeline_mode = #tpu.pipeline_mode<synchronous>, transform_indices = @transform_4, window_bounds = array<i64: 1, 128>}, {pipeline_mode = #tpu.pipeline_mode<synchronous>, transform_indices = @transform_5, window_bounds = array<i64: 1, 128>}, {transform_indices = @transform_6, window_bounds = array<i64: 128, 128>}]} {
    %c0 = arith.constant 0 : index
    %c0_0 = arith.constant 0 : index
    %0 = vector.load %arg1[%c0, %c0_0] : memref<128x80xf32, #tpu.memory_space<vmem>>, vector<128x80xf32>
    %c0_1 = arith.constant 0 : index
    %c0_2 = arith.constant 0 : index
    %1 = vector.load %arg2[%c0_1, %c0_2] : memref<80x128xf32, #tpu.memory_space<vmem>>, vector<80x128xf32>
    %cst = arith.constant dense<0.000000e+00> : vector<128x128xf32>
    %2 = tpu.matmul %0, %1, %cst {dimension_numbers = #tpu.dot_dimension_numbers<[1], [0], [0], [1], [0, 0, 1, 1], [], []>, precision = #tpu.contract_precision<fp32>} : vector<128x80xf32>, vector<80x128xf32>, vector<128x128xf32> -> vector<128x128xf32>
    %c0_3 = arith.constant 0 : index
    %c0_4 = arith.constant 0 : index
    %3 = vector.load %arg3[%c0_3, %c0_4] : memref<80x128xf32, #tpu.memory_space<vmem>>, vector<80x128xf32>
    %cst_5 = arith.constant dense<0.000000e+00> : vector<128x128xf32>
    %4 = tpu.matmul %0, %3, %cst_5 {dimension_numbers = #tpu.dot_dimension_numbers<[1], [0], [0], [1], [0, 0, 1, 1], [], []>, precision = #tpu.contract_precision<fp32>} : vector<128x80xf32>, vector<80x128xf32>, vector<128x128xf32> -> vector<128x128xf32>
    %c0_6 = arith.constant 0 : index
    %c0_7 = arith.constant 0 : index
    %5 = vector.load %arg5[%c0_6, %c0_7] : memref<1x128xf32, #tpu.memory_space<vmem>>, vector<1x128xf32>
    %6 = vector.broadcast %5 : vector<1x128xf32> to vector<128x128xf32>
    %7 = arith.subf %4, %6 : vector<128x128xf32>
    %8 = arith.mulf %7, %7 : vector<128x128xf32>
    %c0_8 = arith.constant 0 : index
    %c0_9 = arith.constant 0 : index
    %9 = vector.load %arg6[%c0_8, %c0_9] : memref<1x128xf32, #tpu.memory_space<vmem>>, vector<1x128xf32>
    %10 = vector.broadcast %9 : vector<1x128xf32> to vector<128x128xf32>
    %11 = arith.mulf %8, %10 : vector<128x128xf32>
    %12 = math.exp %11 : vector<128x128xf32>
    %c0_10 = arith.constant 0 : index
    %c0_11 = arith.constant 0 : index
    %13 = vector.load %arg4[%c0_10, %c0_11] : memref<128x128xf32, #tpu.memory_space<vmem>>, vector<128x128xf32>
    %cst_12 = arith.constant dense<0.000000e+00> : vector<128x128xf32>
    %14 = tpu.matmul %12, %13, %cst_12 {dimension_numbers = #tpu.dot_dimension_numbers<[1], [0], [0], [1], [0, 0, 1, 1], [], []>, precision = #tpu.contract_precision<fp32>} : vector<128x128xf32>, vector<128x128xf32>, vector<128x128xf32> -> vector<128x128xf32>
    %15 = arith.addf %2, %14 : vector<128x128xf32>
    %c0_13 = arith.constant 0 : index
    %c0_14 = arith.constant 0 : index
    %16 = vector.load %arg7[%c0_13, %c0_14] : memref<128x128xf32, #tpu.memory_space<vmem>>, vector<128x128xf32>
    tpu.vector_store %arg7[%c0_13, %c0_14], %15 {strides = array<i32>} : memref<128x128xf32, #tpu.memory_space<vmem>>, vector<128x128xf32>,
    return
  }
  func.func @transform_0(%arg0: i32) -> (i32, i32) {
    %c0_i32 = arith.constant 0 : i32
    %c0_i32_0 = arith.constant 0 : i32
    return %arg0, %c0_i32 : i32, i32
  }
  func.func @transform_1(%arg0: i32) -> (i32, i32) {
    %c0_i32 = arith.constant 0 : i32
    %c0_i32_0 = arith.constant 0 : i32
    %c0_i32_1 = arith.constant 0 : i32
    return %c0_i32, %c0_i32_0 : i32, i32
  }
  func.func @transform_2(%arg0: i32) -> (i32, i32) {
    %c0_i32 = arith.constant 0 : i32
    %c0_i32_0 = arith.constant 0 : i32
    %c0_i32_1 = arith.constant 0 : i32
    return %c0_i32, %c0_i32_0 : i32, i32
  }
  func.func @transform_3(%arg0: i32) -> (i32, i32) {
    %c0_i32 = arith.constant 0 : i32
    %c0_i32_0 = arith.constant 0 : i32
    %c0_i32_1 = arith.constant 0 : i32
    return %c0_i32, %c0_i32_0 : i32, i32
  }
  func.func @transform_4(%arg0: i32) -> (i32, i32) {
    %c0_i32 = arith.constant 0 : i32
    %c0_i32_0 = arith.constant 0 : i32
    %c0_i32_1 = arith.constant 0 : i32
    return %c0_i32, %c0_i32_0 : i32, i32
  }
  func.func @transform_5(%arg0: i32) -> (i32, i32) {
    %c0_i32 = arith.constant 0 : i32
    %c0_i32_0 = arith.constant 0 : i32
    %c0_i32_1 = arith.constant 0 : i32
    return %c0_i32, %c0_i32_0 : i32, i32
  }
  func.func @transform_6(%arg0: i32) -> (i32, i32) {
    %c0_i32 = arith.constant 0 : i32
    %c0_i32_0 = arith.constant 0 : i32
    return %arg0, %c0_i32 : i32, i32
  }
}

</mosaic_0001>

<bundles_post_ra>
// kernel: tpu_custom_call.1
= control target key start
LH: loop header
LB: loop body
LE: loop exit
PB: predicated region body
PF: predicated region fallthrough
CT: control target
= control target key end

     0   :  { %11 = vsyncpa [#allocation3], 0  ;;  %s8071_s0 = inlined_call_operand.vmem [shape: f32[188,80], index: 0, kind: input, shape index: {}]   ;;  %s8072_s1 = inlined_call_operand.vmem [shape: f32[80,128], index: 1, kind: input, shape index: {}]   ;;  %s8073_s2 = inlined_call_operand.vmem [shape: f32[80,128], index: 2, kind: input, shape index: {}]   ;;  %s8074_s3 = inlined_call_operand.vmem [shape: f32[128,128], index: 3, kind: input, shape index: {}]   ;;  %s8075_s4 = inlined_call_operand.vmem [shape: f32[1,128], index: 4, kind: input, shape index: {}]   ;;  %s8076_s5 = inlined_call_operand.vmem [shape: f32[1,128], index: 5, kind: input, shape index: {}]   ;;  %s8077_s6 = inlined_call_operand.hbm [shape: f32[188,128], index: 6, kind: output, shape index: {}]  }
   0x1   :  { %13 = vsyncpa [#allocation3 + $0x1], 0  ;;  %s6537_s21 = smov 0   ;;  %s6539_s22 = smov 0  }
   0x2   :  { %s6541_s23 = smov 0   ;;  %s6543_s24 = smov 0  }
   0x3 LB: > { %s6558_s25 = sadd.s32 4294967295, %s6497_s24   ;;  %s4272_s26 = sadd.s32 4294967294, %s6497_s24   ;;  %s6497_s24 = sphi %s6543_s24, %s8391_s24   ;;  %s6493_s23 = sphi %s6541_s23, %s8390_s23   ;;  %s6489_s22 = sphi %s6539_s22, %s8389_s22   ;;  %s6485_s21 = sphi %s6537_s21, %s8388_s21  }
   0x4   : > { %s6562_s27 = sadd.s32 1, %s6497_s24   ;;  %s157_s28 = sadd.s32 1, %s6493_s23 }
   0x5   : > { %s154_s29 = ssub.s32 %s6497_s24, %s6562_s27  ;;  %p167_p0 = scmp.ne.s32.totalorder %s6493_s23, %s6489_s22 }
   0x6   : > { %p155_p1 = scmp.eq.s32.totalorder %s154_s29, 0  ;;  %p168_p2 = scmp.eq.s32.totalorder %s6558_s25, 1 }
   0x7   : > { %p173_p3 = scmp.ne.s32.totalorder %s6489_s22, %s6485_s21  ;;  %p174_p4 = scmp.eq.s32.totalorder %s4272_s26, 1 }
   0x8   : > { %s6573_s30 = scalar_select %p155_p1, %s6493_s23, %s157_s28  }
   0x9   : > { %p6575_p5 = por %p168_p2, %p167_p0  ;;  %p6579_p6 = por %p174_p4, %p173_p3 }
   0xa   : > { %p4275_p7 = scmp.ge.s32.totalorder %s6497_s24, 1  ;;  %p224_p8 = scmp.lt.s32.totalorder %s6497_s24, 3 }
   0xc   : > { %p225_p9 = pnand %p4275_p7, %p224_p8 }
   0xe   : > { %228 = sbr.rel (%p225_p9) target bundleno = 975 (0x3cf), region = 44 }
  0x15   : > { %v303_v0 = vld [vmem:[%s8073_s2] sm:$0xff]  ;;  %v304_v1 = vld [vmem:[%s8073_s2 + $0x8] sm:$0xff]  ;;  %v305_v2 = vld [vmem:[%s8073_s2 + $0x10] sm:$0xff]  ;;  %s6595_s15 = sshll.u32 %s6558_s25, 4  ;;  %vm313_vm0 = vcmask 654336   ;;  %s255_s26 = sand.u32 1, %s6489_s22  }
  0x16   : > { %v363_v3 = vand.u32 4294901760, %v303_v0  ;;  %v366_v4 = vand.u32 4294901760, %v304_v1  ;;  %v306_v5 = vld [vmem:[%s8073_s2 + $0x18] sm:$0xff]  ;;  %v369_v6 = vand.u32 4294901760, %v305_v2  ;;  %v307_v7 = vld [vmem:[%s8073_s2 + $0x20] sm:$0xff]  ;;  %v308_v8 = vld [vmem:[%s8073_s2 + $0x28] sm:$0xff] }
  0x17   : > { %v372_v9 = vand.u32 4294901760, %v306_v5  ;;  %v375_v10 = vand.u32 4294901760, %v307_v7  ;;  %v378_v11 = vand.u32 4294901760, %v308_v8  ;;  %v309_v12 = vld [vmem:[%s8073_s2 + $0x30] sm:$0xff]  ;;  %v310_v13 = vld [vmem:[%s8073_s2 + $0x38] sm:$0xff]  ;;  %v6615_v14 = vld [vmem:[%s8073_s2 + $0x40] sm:$0xff] }
  0x18   : > { %v6617_v15 = vpack.c.bf16 %v366_v4, %v363_v3  ;;  %v381_v16 = vand.u32 4294901760, %v309_v12  ;;  %v384_v17 = vand.u32 4294901760, %v310_v13  ;;  %v6622_v18 = vld [vmem:[%s8073_s2 + $0x48] sm:$0xff]  ;;  %v8085_v19 = vand.u32 4294901760, %v6615_v14  ;;  %p263_p10 = scmp.lt.s32.totalorder %s6595_s15, 23  ;;  %s4276_s28 = sshll.u32 %s255_s26, 7 }
  0x19   : > { %v6626_v20 = vpack.c.bf16 %v372_v9, %v369_v6  ;;  %v8084_v21 = vand.u32 4294901760, %v6622_v18  ;;  %v6629_v22 = vsub.f32 %v303_v0, %v363_v3  ;;  %v6632_v23 = vpack.c.bf16 %v378_v11, %v375_v10  ;;  %s7990_s29 = scalar_lea.vmem [#allocation2], %s4276_s28  ;;  %s8010_s9 = scalar_lea.sflag [#allocation3], %s255_s26 }
  0x1a   : > { %5660 = vmatprep.subr.bf16.mxu0 %v6617_v15  ;;  %s264_s16 = scalar_select %p263_p10, %s6595_s15, 23  ;;  %v6635_v24 = vsub.f32 %v304_v1, %v366_v4  ;;  %v6637_v25 = vsub.f32 %v305_v2, %v369_v6  ;;  %v6639_v26 = vsub.f32 %v306_v5, %v372_v9  ;;  %v6642_v27 = vpack.c.bf16 %v384_v17, %v381_v16 }
  0x1b   : > { %5662 = vmatpush3.bf16.msra.mxu0 %v6617_v15  ;;  %v8083_v28 = vand.u32 4294901760, %v6629_v22  ;;  %v6645_v29 = vsub.f32 %v307_v7, %v375_v10  ;;  %v6647_v30 = vsub.f32 %v308_v8, %v378_v11  ;;  %v6654_v31 = vpack.c.bf16 %v8084_v21, %v8085_v19  ;;  %s4199_s10 = ssub.s32 (%p6575_p5), 24, %s6595_s15 }
  0x1c   : > { %5664 = vmatprep.subr.bf16.mxu0 %v6626_v20  ;;  %s4278_s17 = sshll.u32 %s264_s16, 3  ;;  %v8082_v32 = vand.u32 4294901760, %v6635_v24  ;;  %v8081_v33 = vand.u32 4294901760, %v6637_v25  ;;  %v8080_v34 = vand.u32 4294901760, %v6639_v26  ;;  %v6669_v38 = vsub.f32 %v309_v12, %v381_v16  ;;  %p4200_p11 = scmp.lt.s32.totalorder (%p6575_p5), %s4199_s10, 16 }
  0x1d   : > { %s6662_s20 = scalar_lea.vmem %s8071_s0, %s4278_s17  ;;  %v601_v35 = vsub.f32 %v6629_v22, %v8083_v28  ;;  %v8079_v36 = vand.u32 4294901760, %v6645_v29  ;;  %v8078_v37 = vand.u32 4294901760, %v6647_v30  ;;  %v6683_v45 = vsub.f32 %v310_v13, %v384_v17 }
  0x1e   : > { %v277_v39 = vld [vmem:[%s6662_s20] sm:$0xff]  ;;  %v278_v40 = vld [vmem:[%s6662_s20 + $0x8] sm:$0xff]  ;;  %v608_v41 = vsub.f32 %v6635_v24, %v8082_v32  ;;  %v279_v42 = vld [vmem:[%s6662_s20 + $0x10] sm:$0xff]  ;;  %v615_v43 = vsub.f32 %v6637_v25, %v8081_v33  ;;  %v622_v44 = vsub.f32 %v6639_v26, %v8080_v34 }
  0x1f   : > { %5666 = vmatpush3.bf16.msra.mxu0 %v6626_v20  ;;  %v315_v46 = vsel %vm313_vm0, %v277_v39, 0  ;;  %v318_v47 = vsel %vm313_vm0, %v278_v40, 0  ;;  %v602_v48 = vand.u32 4294901760, %v601_v35  ;;  %v321_v49 = vsel %vm313_vm0, %v279_v42, 0  ;;  %v280_v50 = vld [vmem:[%s6662_s20 + $0x18] sm:$0xff]  ;;  %v281_v51 = vld [vmem:[%s6662_s20 + $0x20] sm:$0xff] }
  0x20   : > { %5668 = vmatprep.subr.bf16.mxu0 %v6632_v23  ;;  %v6692_v52 = vand.u32 4294901760, %v315_v46  ;;  %v6694_v53 = vand.u32 4294901760, %v318_v47  ;;  %v609_v54 = vand.u32 4294901760, %v608_v41  ;;  %v6696_v55 = vand.u32 4294901760, %v321_v49  ;;  %v282_v56 = vld [vmem:[%s6662_s20 + $0x28] sm:$0xff]  ;;  %v283_v1 = vld [vmem:[%s6662_s20 + $0x30] sm:$0xff] }
  0x21   : > { %v324_v57 = vsel %vm313_vm0, %v280_v50, 0  ;;  %v327_v58 = vsel %vm313_vm0, %v281_v51, 0  ;;  %v616_v59 = vand.u32 4294901760, %v615_v43  ;;  %v623_v0 = vand.u32 4294901760, %v622_v44  ;;  %v284_v2 = vld [vmem:[%s6662_s20 + $0x38] sm:$0xff]  ;;  %v290_v19 = vld [vmem:[%s6662_s20 + $0x68] sm:$0xff] }
  0x22   : > { %8207 = vst [vmem:[#allocation5_spill] sm:$0xff] %v6692_v52  ;;  %8208 = vst [vmem:[#allocation6_spill] sm:$0xff] %v6694_v53  ;;  %v6703_v61 = vsub.f32 %v315_v46, %v6692_v52  ;;  %v6706_v62 = vsub.f32 %v318_v47, %v6694_v53  ;;  %v6709_v63 = vsub.f32 %v321_v49, %v6696_v55  ;;  %v6714_v4 = vand.u32 4294901760, %v324_v57  ;;  %v285_v46 = vld [vmem:[%s6662_s20 + $0x40] sm:$0xff]  ;;  %v288_v33 = vld [vmem:[%s6662_s20 + $0x58] sm:$0xff] }
  0x23   : > { %8209 = vst [vmem:[#allocation7_spill] sm:$0xff] %v6696_v55  ;;  %5670 = vmatpush3.bf16.msra.mxu0 %v6632_v23  ;;  %v5679_v3 = vpack.c.bf16 %v609_v54, %v602_v48  ;;  %v6716_v5 = vand.u32 4294901760, %v327_v58  ;;  %v330_v6 = vsel %vm313_vm0, %v282_v56, 0  ;;  %v333_v13 = vsel %vm313_vm0, %v283_v1, 0 }
  0x24   : > { %8210 = vst [vmem:[#allocation8_spill] sm:$0xff] %v6703_v61  ;;  %8211 = vst [vmem:[#allocation9_spill] sm:$0xff] %v6706_v62  ;;  %5672 = vmatprep.subr.bf16.mxu0 %v6642_v27  ;;  %v6721_v7 = vand.u32 4294901760, %v6703_v61  ;;  %v6724_v8 = vand.u32 4294901760, %v6706_v62  ;;  %v6727_v9 = vand.u32 4294901760, %v6709_v63  ;;  %v6729_v10 = vand.u32 4294901760, %v330_v6 }
  0x25   : > { %8212 = vst [vmem:[#allocation10_spill] sm:$0xff] %v6709_v63  ;;  %8213 = vst [vmem:[#allocation11_spill] sm:$0xff] %v6714_v4  ;;  %v6732_v11 = vsub.f32 %v324_v57, %v6714_v4  ;;  %v6735_v12 = vsub.f32 %v327_v58, %v6716_v5  ;;  %v336_v16 = vsel %vm313_vm0, %v284_v2, 0  ;;  %v6755_v43 = vand.u32 4294901760, %v333_v13  ;;  %v286_v2 = vld [vmem:[%s6662_s20 + $0x48] sm:$0xff] }
  0x26   : > { %8214 = vst [vmem:[#allocation12_spill] sm:$0xff] %v6716_v5  ;;  %8215 = vst [vmem:[#allocation13_spill] sm:$0xff] %v6721_v7  ;;  %v440_v17 = vsub.f32 %v6703_v61, %v6721_v7  ;;  %v450_v35 = vsub.f32 %v6706_v62, %v6724_v8  ;;  %v460_v39 = vsub.f32 %v6709_v63, %v6727_v9  ;;  %v6757_v44 = vand.u32 4294901760, %v336_v16 }
  0x27   : > { %8216 = vst [vmem:[#allocation14_spill] sm:$0xff] %v6724_v8  ;;  %8217 = vst [vmem:[#allocation15_spill] sm:$0xff] %v6727_v9  ;;  %v6746_v40 = vsub.f32 %v330_v6, %v6729_v10  ;;  %5674 = vmatpush3.bf16.msra.mxu0 %v6642_v27  ;;  %v6750_v41 = vand.u32 4294901760, %v6732_v11  ;;  %v6753_v42 = vand.u32 4294901760, %v6735_v12  ;;  %v5683_v49 = vpack.c.bf16 %v623_v0, %v616_v59  ;;  %v287_v6 = vld [vmem:[%s6662_s20 + $0x50] sm:$0xff]  ;;  %v292_v8 = vld [vmem:[%s6662_s20 + $0x78] sm:$0xff] }
  0x28   : > { %8218 = vst [vmem:[#allocation16_spill] sm:$0xff] %v6729_v10  ;;  %8219 = vst [vmem:[#allocation17_spill] sm:$0xff] %v6732_v11  ;;  %5676 = vmatprep.subr.bf16.mxu0 %v6654_v31  ;;  %v6761_v47 = vand.u32 4294901760, %v440_v17  ;;  %v6763_v48 = vand.u32 4294901760, %v450_v35  ;;  %v6773_v56 = vsub.f32 %v333_v13, %v6755_v43  ;;  %v6776_v57 = vsub.f32 %v336_v16, %v6757_v44  ;;  %v291_v9 = vld [vmem:[%s6662_s20 + $0x70] sm:$0xff] }
  0x29   : > { %8220 = vst [vmem:[#allocation18_spill] sm:$0xff] %v6735_v12  ;;  %8221 = vst [vmem:[#allocation19_spill] sm:$0xff] %v6746_v40  ;;  %v6766_v50 = vand.u32 4294901760, %v6746_v40  ;;  %v470_v51 = vsub.f32 %v6732_v11, %v6750_v41  ;;  %v480_v54 = vsub.f32 %v6735_v12, %v6753_v42  ;;  %v629_v59 = vsub.f32 %v6645_v29, %v8079_v36 }
  0x2a   : > { %8222 = vst [vmem:[#allocation20_spill] sm:$0xff] %v6750_v41  ;;  %8223 = vst [vmem:[#allocation21_spill] sm:$0xff] %v6753_v42  ;;  %4815 = vmatprep.mubr.f32.mxu0 %v6761_v47  ;;  %v636_v0 = vsub.f32 %v6647_v30, %v8078_v37  ;;  %v339_v1 = vsel %vm313_vm0, %v285_v46, 0  ;;  %v6791_v13 = vand.u32 4294901760, %v460_v39  ;;  %v6796_v17 = vand.u32 4294901760, %v6773_v56 }
  0x2b   : > { %8224 = vst [vmem:[#allocation22_spill] sm:$0xff] %v6755_v43  ;;  %8225 = vst [vmem:[#allocation23_spill] sm:$0xff] %v6757_v44  ;;  %v490_v58 = vsub.f32 %v6746_v40, %v6766_v50  ;;  %5678 = vmatpush3.bf16.msra.mxu0 %v6654_v31  ;;  %v6793_v16 = vand.u32 4294901760, %v470_v51  ;;  %v6799_v35 = vand.u32 4294901760, %v6776_v57  ;;  %v6801_v37 = vand.u32 4294901760, %v480_v54 }
  0x2c   : > { %8226 = vst [vmem:[#allocation24_spill] sm:$0xff] %v6761_v47  ;;  %8227 = vst [vmem:[#allocation25_spill] sm:$0xff] %v6763_v48  ;;  %5680 = vmatprep.subr.bf16.mxu0 %v5679_v3  ;;  %v630_v46 = vand.u32 4294901760, %v629_v59  ;;  %v637_v36 = vand.u32 4294901760, %v636_v0  ;;  %v6803_v34 = vand.u32 4294901760, %v339_v1  ;;  %v500_v51 = vsub.f32 %v6773_v56, %v6796_v17 }
  0x2d   : > { %8228 = vst [vmem:[#allocation26_spill] sm:$0xff] %v6766_v50  ;;  %8229 = vst [vmem:[#allocation27_spill] sm:$0xff] %v6773_v56  ;;  %v6806_v39 = vand.u32 4294901760, %v490_v58  ;;  %v342_v32 = vsel %vm313_vm0, %v286_v2, 0  ;;  %v345_v28 = vsel %vm313_vm0, %v287_v6, 0  ;;  %v510_v54 = vsub.f32 %v6776_v57, %v6799_v35  ;;  %v289_v58 = vld [vmem:[%s6662_s20 + $0x60] sm:$0xff] }
  0x2e   : > { %8230 = vst [vmem:[#allocation28_spill] sm:$0xff] %v6776_v57  ;;  %8231 = vst [vmem:[#allocation29_spill] sm:$0xff] %v6791_v13  ;;  %4816 = vmatmul.mubr.f32.vlgmr.msra.gmra.mrb[0].mxu0 %v6763_v48  ;;  %v6816_v59 = vsub.f32 %v339_v1, %v6803_v34  ;;  %v6818_v0 = vand.u32 4294901760, %v342_v32  ;;  %v6820_v21 = vand.u32 4294901760, %v345_v28  ;;  %v6825_v2 = vand.u32 4294901760, %v500_v51 }
  0x2f   : > { %8232 = vst [vmem:[#allocation30_spill] sm:$0xff] %v6793_v16  ;;  %8233 = vst [vmem:[#allocation31_spill] sm:$0xff] %v6796_v17  ;;  %5682 = vmatpush3.bf16.msra.mxu0 %v5679_v3  ;;  %4818 = vmatprep.mubr.f32.mxu0 %v6791_v13  ;;  %v5687_v6 = vpack.c.bf16 %v637_v36, %v630_v46  ;;  %v348_v60 = vsel %vm313_vm0, %v288_v33, 0  ;;  %v8242_v48 = vand.u32 4294901760, %v6669_v38  ;;  %v649_v36 = vand.u32 4294901760, %v6683_v45 }
  0x30   : > { %8234 = vst [vmem:[#allocation32_spill] sm:$0xff] %v6799_v35  ;;  %8235 = vst [vmem:[#allocation33_spill] sm:$0xff] %v6801_v37  ;;  %5684 = vmatprep.subr.bf16.mxu0 %v5683_v49  ;;  %v6832_v1 = vand.u32 4294901760, %v6816_v59  ;;  %v6835_v35 = vsub.f32 %v342_v32, %v6818_v0  ;;  %v6838_v3 = vsub.f32 %v345_v28, %v6820_v21  ;;  %v6840_v13 = vand.u32 4294901760, %v348_v60 }
  0x31   : > { %8236 = vst [vmem:[#allocation34_spill] sm:$0xff] %v6803_v34  ;;  %8237 = vst [vmem:[#allocation35_spill] sm:$0xff] %v6806_v39  ;;  %v643_v47 = vsub.f32 %v6669_v38, %v8242_v48  ;;  %v351_v33 = vsel %vm313_vm0, %v289_v58, 0  ;;  %v354_v46 = vsel %vm313_vm0, %v290_v19, 0  ;;  %v650_v19 = vsub.f32 %v6683_v45, %v649_v36 }
  0x32   : > { %8238 = vst [vmem:[#allocation36_spill] sm:$0xff] %v6816_v59  ;;  %8239 = vst [vmem:[#allocation37_spill] sm:$0xff] %v6818_v0  ;;  %4819 = vmatmul.mubr.f32.gmra.mrb[2].mxu0 %v6793_v16  ;;  %v520_v48 = vsub.f32 %v6816_v59, %v6832_v1  ;;  %v6849_v32 = vand.u32 4294901760, %v6835_v35  ;;  %v6852_v28 = vand.u32 4294901760, %v6838_v3  ;;  %v6859_v58 = vand.u32 4294901760, %v351_v33 }
  0x33   : > { %8240 = vst [vmem:[#allocation38_spill] sm:$0xff] %v6820_v21  ;;  %8241 = vst [vmem:[#allocation39_spill] sm:$0xff] %v6825_v2  ;;  %v644_v51 = vand.u32 4294901760, %v643_v47  ;;  %v6855_v47 = vsub.f32 %v348_v60, %v6840_v13  ;;  %4821 = vmatprep.mubr.f32.mxu0 %v6801_v37  ;;  %5686 = vmatpush3.bf16.msra.mxu0 %v5683_v49  ;;  %v6861_v16 = vand.u32 4294901760, %v354_v46  ;;  %v6868_v50 = vand.u32 4294901760, %v510_v54 }
  0x34   : > { %8243 = vst [vmem:[#allocation40_spill] sm:$0xff] %v6832_v1  ;;  %8244 = vst [vmem:[#allocation41_spill] sm:$0xff] %v6835_v35  ;;  %v8252_v1 = vand.u32 4294901760, %v6615_v14  ;;  %5688 = vmatprep.subr.bf16.mxu0 %v5687_v6  ;;  %v651_v42 = vand.u32 4294901760, %v650_v19  ;;  %v6874_v49 = vsub.f32 %v351_v33, %v6859_v58  ;;  %v530_v54 = vsub.f32 %v6835_v35, %v6849_v32 }
  0x35   : > { %8245 = vst [vmem:[#allocation42_spill] sm:$0xff] %v6838_v3  ;;  %8246 = vst [vmem:[#allocation43_spill] sm:$0xff] %v6840_v13  ;;  %v6871_v60 = vand.u32 4294901760, %v6855_v47  ;;  %v6877_v37 = vsub.f32 %v354_v46, %v6861_v16  ;;  %v8258_v33 = vand.u32 4294901760, %v6622_v18 }
  0x36   : > { %8247 = vst [vmem:[#allocation44_spill] sm:$0xff] %v6849_v32  ;;  %8248 = vst [vmem:[#allocation45_spill] sm:$0xff] %v6852_v28  ;;  %v6866_v17 = vsub.f32 %v6615_v14, %v8252_v1  ;;  %4822 = vmatmul.mubr.f32.gmra.mrb[4].mxu0 %v6806_v39  ;;  %v6883_v14 = vand.u32 4294901760, %v520_v48  ;;  %v540_v1 = vsub.f32 %v6838_v3, %v6852_v28  ;;  %v6898_v48 = vand.u32 4294901760, %v6874_v49 }
  0x37   : > { %8249 = vst [vmem:[#allocation46_spill] sm:$0xff] %v6855_v47  ;;  %8250 = vst [vmem:[#allocation47_spill] sm:$0xff] %v6859_v58  ;;  %v6892_v19 = vsub.f32 %v6622_v18, %v8258_v33  ;;  %4824 = vmatprep.mubr.f32.mxu0 %v6825_v2  ;;  %5690 = vmatpush3.bf16.msra.mxu0 %v5687_v6  ;;  %v550_v46 = vsub.f32 %v6855_v47, %v6871_v60  ;;  %v6902_v7 = vand.u32 4294901760, %v6877_v37 }
  0x38   : > { %8251 = vst [vmem:[#allocation48_spill] sm:$0xff] %v6861_v16  ;;  %8253 = vst [vmem:[#allocation49_spill] sm:$0xff] %v6868_v50  ;;  %v656_v41 = vand.u32 4294901760, %v6866_v17  ;;  %v5691_v39 = vpack.c.bf16 %v651_v42, %v644_v51  ;;  %v357_v18 = vsel %vm313_vm0, %v291_v9, 0  ;;  %v360_v33 = vsel %vm313_vm0, %v292_v8, 0 }
  0x39   : > { %8254 = vst [vmem:[#allocation50_spill] sm:$0xff] %v6871_v60  ;;  %8255 = vst [vmem:[#allocation51_spill] sm:$0xff] %v6874_v49  ;;  %v663_v28 = vand.u32 4294901760, %v6892_v19  ;;  %v6907_v6 = vand.u32 4294901760, %v357_v18  ;;  %v6910_v42 = vand.u32 4294901760, %v530_v54  ;;  %v6913_v60 = vand.u32 4294901760, %v360_v33 }
  0x3a   : > { %8256 = vst [vmem:[#allocation52_spill] sm:$0xff] %v6877_v37  ;;  %8257 = vst [vmem:[#allocation53_spill] sm:$0xff] %v6883_v14  ;;  %v657_v32 = vsub.f32 %v6866_v17, %v656_v41  ;;  %5692 = vmatprep.subr.bf16.mxu0 %v5691_v39  ;;  %4825 = vmatmul.mubr.f32.gmra.mrb[6].mxu0 %v6868_v50  ;;  %v6916_v47 = vand.u32 4294901760, %v540_v1  ;;  %v6918_v3 = vand.u32 4294901760, %v550_v46 }
  0x3b   : > { %8259 = vst [vmem:[#allocation54_spill] sm:$0xff] %v6898_v48  ;;  %8260 = vst [vmem:[#allocation55_spill] sm:$0xff] %v6902_v7  ;;  %v664_v2 = vsub.f32 %v6892_v19, %v663_v28  ;;  %4827 = vmatprep.mubr.f32.mxu0 %v6883_v14  ;;  %5694 = vmatpush3.bf16.msra.mxu0 %v5691_v39  ;;  %v560_v8 = vsub.f32 %v6874_v49, %v6898_v48  ;;  %v8269_v39 = vand.u32 4294901760, %v6629_v22 }
  0x3c   : > { %8261 = vst [vmem:[#allocation56_spill] sm:$0xff] %v6907_v6  ;;  %8262 = vst [vmem:[#allocation57_spill] sm:$0xff] %v6910_v42  ;;  %v658_v51 = vand.u32 4294901760, %v657_v32  ;;  %v6923_v9 = vsub.f32 %v357_v18, %v6907_v6  ;;  %v570_v32 = vsub.f32 %v6877_v37, %v6902_v7  ;;  %v6928_v50 = vsub.f32 %v360_v33, %v6913_v60 }
  0x3d   : > { %8263 = vst [vmem:[#allocation58_spill] sm:$0xff] %v6913_v60  ;;  %8264 = vst [vmem:[#allocation59_spill] sm:$0xff] %v6916_v47  ;;  %v665_v54 = vand.u32 4294901760, %v664_v2  ;;  %v5699_v1 = vpack.c.bf16 %v6635_v24, %v6629_v22  ;;  %v8270_v14 = vand.u32 4294901760, %v6635_v24  ;;  %v8271_v18 = vand.u32 4294901760, %v6637_v25 }
  0x3e   : > { %8265 = vst [vmem:[#allocation60_spill] sm:$0xff] %v6918_v3  ;;  %8266 = vst [vmem:[#allocation61_spill] sm:$0xff] %v6923_v9  ;;  %v6933_v46 = vand.u32 4294901760, %v6923_v9  ;;  %v8272_v7 = vand.u32 4294901760, %v6639_v26  ;;  %v8273_v33 = vand.u32 4294901760, %v6645_v29  ;;  %v8274_v37 = vand.u32 4294901760, %v6647_v30  ;;  %4828 = vmatmul.mubr.f32.gmra.mrb[8].mxu0 %v6910_v42 }
  0x3f   : > { %8267 = vst [vmem:[#allocation62_spill] sm:$0xff] %v6928_v50  ;;  %v6939_v48 = vpack.c.bf16 %v8270_v14, %v8269_v39  ;;  %v5695_v35 = vpack.c.bf16 %v665_v54, %v658_v51  ;;  %v6955_v22 = vand.u32 4294901760, %v6928_v50  ;;  %v8276_v24 = vand.u32 4294901760, %v6669_v38  ;;  %4830 = vmatprep.mubr.f32.mxu0 %v6916_v47 }
  0x40   : > { %8268 = vst [vmem:[#allocation63_spill] sm:$0xff] %v6933_v46  ;;  %v6945_v2 = vpack.c.bf16 %v8272_v7, %v8271_v18  ;;  %v6951_v49 = vpack.c.bf16 %v8274_v37, %v8273_v33  ;;  %v6961_v39 = vpack.c.bf16 %v663_v28, %v656_v41  ;;  %v6964_v7 = vand.u32 4294901760, %v560_v8  ;;  %v8286_v33 = vld [vmem:[#allocation13_spill] sm:$0xff] }
  0x41   : > { %8275 = vst [vmem:[#allocation64_spill] sm:$0xff] %v6955_v22  ;;  %v6959_v14 = vpack.c.bf16 %v649_v36, %v8276_v24  ;;  %v580_v37 = vsub.f32 %v6923_v9, %v6933_v46  ;;  %5696 = vmatprep.subr.bf16.mxu0 %v5695_v35  ;;  %v6969_v51 = vand.u32 4294901760, %v570_v32  ;;  %v590_v54 = vsub.f32 %v6928_v50, %v6955_v22  ;;  %v8283_v32 = vld [vmem:[#allocation46_spill] sm:$0xff]  ;;  %v8285_v18 = vld [vmem:[#allocation52_spill] sm:$0xff] }
  0x42   : > { %8277 = vst [vmem:[#allocation65_spill] sm:$0xff] %v6964_v7  ;;  %5698 = vmatpush3.bf16.msra.mxu0 %v5695_v35  ;;  %v5703_v35 = vpack.c.bf16 %v6639_v26, %v6637_v25  ;;  %v5707_v28 = vpack.c.bf16 %v6647_v30, %v6645_v29  ;;  %v5711_v8 = vpack.c.bf16 %v6683_v45, %v6669_v38  ;;  %v7009_v26 = vld [vmem:[%s8074_s3] sm:$0xff]  ;;  %v7014_v29 = vld [vmem:[%s8074_s3 + $0x8] sm:$0xff] }
  0x43   : > { %4831 = vmatmul.mubr.f32.gmra.mrb[10].mxu0 %v6918_v3  ;;  %8278 = vst [vmem:[#allocation66_spill] sm:$0xff] %v6969_v51  ;;  %5700 = vmatprep.subr.bf16.mxu0 %v5699_v1  ;;  %v6974_v41 = vand.u32 4294901760, %v580_v37  ;;  %v6977_v36 = vand.u32 4294901760, %v590_v54  ;;  %v5715_v25 = vpack.c.bf16 %v6892_v19, %v6866_v17  ;;  %v8134_v30 = vand.u32 4294901760, %v7009_v26  ;;  %v8281_v17 = vld [vmem:[#allocation41_spill] sm:$0xff]  ;;  %v8282_v19 = vld [vmem:[#allocation42_spill] sm:$0xff] }
  0x44   : > { %4833 = vmatprep.mubr.f32.mxu0 %v6964_v7  ;;  %v8133_v38 = vand.u32 4294901760, %v7014_v29  ;;  %v8287_v24 = vld [vmem:[#allocation14_spill] sm:$0xff]  ;;  %v8288_v37 = vld [vmem:[#allocation15_spill] sm:$0xff]  ;;  %v8289_v54 = vld [vmem:[#allocation20_spill] sm:$0xff] }
  0x45   : > { %8279 = vst [vmem:[#allocation67_spill] sm:$0xff] %v6974_v41  ;;  %8280 = vst [vmem:[#allocation68_spill] sm:$0xff] %v6977_v36 }
  0x46   : > { %v7023_v45 = vpack.c.bf16 %v8133_v38, %v8134_v30  ;;  %v8295_v38 = vld [vmem:[#allocation44_spill] sm:$0xff]  ;;  %v8297_v30 = vld [vmem:[#allocation50_spill] sm:$0xff] }
  0x47   : > { %4834 = vmatmul.mubr.f32.gmra.mrb[12].mxu0 %v6969_v51 }
  0x48   : > { %4836 = vmatprep.mubr.f32.mxu0 %v6974_v41  ;;  %5876 = vmatprep.subr.bf16.mxu1 %v7023_v45 }
  0x49   : > { %5878 = vmatpush3.bf16.msra.mxu1 %v7023_v45 }
  0x4b   : > { %4837 = vmatmul.mubr.f32.gmra.mrb[14].mxu0 %v6977_v36 }
  0x4c   : > { %4859 = vmatprep.mubr.f32.mxu0 %v6692_v52 }
  0x4f   : > { %4860 = vmatmul.mubr.f32.vlgmr.msra.gmra.mrb[0].mxu0 %v6694_v53 }
  0x50   : > { %5702 = vmatpush3.bf16.msra.mxu0 %v5699_v1  ;;  %4862 = vmatprep.mubr.f32.mxu0 %v6696_v55  ;;  %v8284_v1 = vld [vmem:[#allocation51_spill] sm:$0xff] }
  0x51   : > { %5704 = vmatprep.subr.bf16.mxu0 %v5703_v35 }
  0x53   : > { %4863 = vmatmul.mubr.f32.gmra.mrb[2].mxu0 %v6714_v4 }
  0x54   : > { %4865 = vmatprep.mubr.f32.mxu0 %v6716_v5  ;;  %5706 = vmatpush3.bf16.msra.mxu0 %v5703_v35  ;;  %v8290_v35 = vld [vmem:[#allocation21_spill] sm:$0xff] }
  0x55   : > { %5708 = vmatprep.subr.bf16.mxu0 %v5707_v28 }
  0x57   : > { %4866 = vmatmul.mubr.f32.gmra.mrb[4].mxu0 %v6729_v10 }
  0x58   : > { %4868 = vmatprep.mubr.f32.mxu0 %v6755_v43  ;;  %5710 = vmatpush3.bf16.msra.mxu0 %v5707_v28  ;;  %v8291_v28 = vld [vmem:[#allocation26_spill] sm:$0xff] }
  0x59   : > { %5712 = vmatprep.subr.bf16.mxu0 %v5711_v8 }
  0x5b   : > { %4869 = vmatmul.mubr.f32.gmra.mrb[6].mxu0 %v6757_v44 }
  0x5c   : > { %4871 = vmatprep.mubr.f32.mxu0 %v6803_v34  ;;  %5714 = vmatpush3.bf16.msra.mxu0 %v5711_v8  ;;  %v8292_v8 = vld [vmem:[#allocation31_spill] sm:$0xff] }
  0x5d   : > { %5716 = vmatprep.subr.bf16.mxu0 %v5715_v25 }
  0x5f   : > { %4872 = vmatmul.mubr.f32.gmra.mrb[8].mxu0 %v6818_v0 }
  0x60   : > { %4874 = vmatprep.mubr.f32.mxu0 %v6820_v21  ;;  %5718 = vmatpush3.bf16.msra.mxu0 %v5715_v25  ;;  %v8294_v25 = vld [vmem:[#allocation40_spill] sm:$0xff] }
  0x61   : > { %5720 = vmatprep.subr.bf16.mxu0 %v6617_v15 }
  0x63   : > { %4875 = vmatmul.mubr.f32.gmra.mrb[10].mxu0 %v6840_v13 }
  0x64   : > { %4877 = vmatprep.mubr.f32.mxu0 %v6859_v58 }
  0x67   : > { %4878 = vmatmul.mubr.f32.gmra.mrb[12].mxu0 %v6861_v16 }
  0x68   : > { %4880 = vmatprep.mubr.f32.mxu0 %v6907_v6 }
  0x6b   : > { %4881 = vmatmul.mubr.f32.gmra.mrb[14].mxu0 %v6913_v60 }
  0x6c   : > { %4903 = vmatprep.mubr.f32.mxu0 %v6703_v61 }
  0x6f   : > { %4904 = vmatmul.mubr.f32.vlgmr.msra.gmra.mrb[0].mxu0 %v6706_v62 }
  0x70   : > { %5722 = vmatpush3.bf16.msra.mxu0 %v6617_v15  ;;  %4906 = vmatprep.mubr.f32.mxu0 %v6709_v63 }
  0x71   : > { %5724 = vmatprep.subr.bf16.mxu0 %v6626_v20 }
  0x73   : > { %4907 = vmatmul.mubr.f32.gmra.mrb[2].mxu0 %v6732_v11 }
  0x74   : > { %4909 = vmatprep.mubr.f32.mxu0 %v6735_v12  ;;  %5726 = vmatpush3.bf16.msra.mxu0 %v6626_v20 }
  0x75   : > { %5728 = vmatprep.subr.bf16.mxu0 %v6632_v23 }
  0x77   : > { %4910 = vmatmul.mubr.f32.gmra.mrb[4].mxu0 %v6746_v40 }
  0x78   : > { %4912 = vmatprep.mubr.f32.mxu0 %v6773_v56  ;;  %5730 = vmatpush3.bf16.msra.mxu0 %v6632_v23 }
  0x79   : > { %5732 = vmatprep.subr.bf16.mxu0 %v6642_v27 }
  0x7b   : > { %4913 = vmatmul.mubr.f32.gmra.mrb[6].mxu0 %v6776_v57 }
  0x7c   : > { %4915 = vmatprep.mubr.f32.mxu0 %v6816_v59  ;;  %5734 = vmatpush3.bf16.msra.mxu0 %v6642_v27 }
  0x7d   : > { %5736 = vmatprep.subr.bf16.mxu0 %v6654_v31 }
  0x7f   : > { %4916 = vmatmul.mubr.f32.gmra.mrb[8].mxu0 %v8281_v17 }
  0x80   : > { %4918 = vmatprep.mubr.f32.mxu0 %v8282_v19  ;;  %5738 = vmatpush3.bf16.msra.mxu0 %v6654_v31 }
  0x81   : > { %5740 = vmatprep.subr.bf16.mxu0 %v6939_v48 }
  0x83   : > { %4919 = vmatmul.mubr.f32.gmra.mrb[10].mxu0 %v8283_v32 }
  0x84   : > { %4921 = vmatprep.mubr.f32.mxu0 %v8284_v1  ;;  %v8301_v1 = vand.u32 4294901760, %v7014_v29 }
  0x86   : > { %v7281_v32 = vsub.f32 %v7014_v29, %v8301_v1 }
  0x87   : > { %4922 = vmatmul.mubr.f32.gmra.mrb[12].mxu0 %v8285_v18 }
  0x88   : > { %4924 = vmatprep.mubr.f32.mxu0 %v6923_v9 }
  0x8b   : > { %4925 = vmatmul.mubr.f32.gmra.mrb[14].mxu0 %v6928_v50 }
  0x8c   : > { %4947 = vmatprep.mubr.f32.mxu0 %v8286_v33  ;;  %v7257_v33 = vld [vmem:[%s8074_s3 + $0x78] sm:$0xff] }
  0x8d   : > { %v8151_v9 = vand.u32 4294901760, %v7257_v33 }
  0x8f   : > { %4948 = vmatmul.mubr.f32.vlgmr.msra.gmra.mrb[0].mxu0 %v8287_v24 }
  0x90   : > { %5742 = vmatpush3.bf16.msra.mxu0 %v6939_v48  ;;  %4950 = vmatprep.mubr.f32.mxu0 %v8288_v37  ;;  %v8293_v48 = vld [vmem:[#allocation32_spill] sm:$0xff] }
  0x91   : > { %5744 = vmatprep.subr.bf16.mxu0 %v6945_v2 }
  0x93   : > { %4951 = vmatmul.mubr.f32.gmra.mrb[2].mxu0 %v8289_v54  ;;  %v7235_v54 = vld [vmem:[%s8074_s3 + $0x68] sm:$0xff] }
  0x94   : > { %4953 = vmatprep.mubr.f32.mxu0 %v8290_v35  ;;  %5746 = vmatpush3.bf16.msra.mxu0 %v6945_v2  ;;  %v8296_v2 = vld [vmem:[#allocation45_spill] sm:$0xff]  ;;  %v8149_v24 = vand.u32 4294901760, %v7235_v54 }
  0x95   : > { %5748 = vmatprep.subr.bf16.mxu0 %v6951_v49 }
  0x97   : > { %4954 = vmatmul.mubr.f32.gmra.mrb[4].mxu0 %v8291_v28 }
  0x98   : > { %4956 = vmatprep.mubr.f32.mxu0 %v8292_v8  ;;  %5750 = vmatpush3.bf16.msra.mxu0 %v6951_v49  ;;  %v8298_v49 = vld [vmem:[#allocation54_spill] sm:$0xff]  ;;  %v8299_v8 = vld [vmem:[#allocation55_spill] sm:$0xff] }
  0x99   : > { %5752 = vmatprep.subr.bf16.mxu0 %v6959_v14 }
  0x9b   : > { %4957 = vmatmul.mubr.f32.gmra.mrb[6].mxu0 %v8293_v48  ;;  %v7213_v48 = vld [vmem:[%s8074_s3 + $0x58] sm:$0xff] }
  0x9c   : > { %4959 = vmatprep.mubr.f32.mxu0 %v8294_v25  ;;  %5754 = vmatpush3.bf16.msra.mxu0 %v6959_v14  ;;  %v7142_v14 = vld [vmem:[%s8074_s3 + $0x20] sm:$0xff]  ;;  %v8145_v35 = vand.u32 4294901760, %v7213_v48 }
  0x9d   : > { %5756 = vmatprep.subr.bf16.mxu0 %v6961_v39 }
  0x9f   : > { %4960 = vmatmul.mubr.f32.gmra.mrb[8].mxu0 %v8295_v38 }
  0xa0   : > { %4962 = vmatprep.mubr.f32.mxu0 %v8296_v2  ;;  %5758 = vmatpush3.bf16.msra.mxu0 %v6961_v39  ;;  %v7147_v39 = vld [vmem:[%s8074_s3 + $0x28] sm:$0xff] }
  0xa1   : > { %5760 = vmatprep.subr.bf16.mxu0 %v6617_v15  ;;  %v7191_v2 = vld [vmem:[%s8074_s3 + $0x48] sm:$0xff] }
  0xa2   : > { %v8143_v25 = vand.u32 4294901760, %v7191_v2 }
  0xa3   : > { %4963 = vmatmul.mubr.f32.gmra.mrb[10].mxu0 %v8297_v30 }
  0xa4   : > { %4965 = vmatprep.mubr.f32.mxu0 %v8298_v49 }
  0xa7   : > { %4966 = vmatmul.mubr.f32.gmra.mrb[12].mxu0 %v8299_v8  ;;  %v7169_v8 = vld [vmem:[%s8074_s3 + $0x38] sm:$0xff] }
  0xa8   : > { %4968 = vmatprep.mubr.f32.mxu0 %v6933_v46  ;;  %v8139_v46 = vand.u32 4294901760, %v7147_v39  ;;  %v8141_v30 = vand.u32 4294901760, %v7169_v8 }
  0xab   : > { %4969 = vmatmul.mubr.f32.gmra.mrb[14].mxu0 %v6955_v22  ;;  %v8140_v22 = vand.u32 4294901760, %v7142_v14 }
  0xac   : > { %4991 = vmatprep.mubr.f32.mxu0 %v6692_v52 }
  0xaf   : > { %4992 = vmatmul.mubr.f32.vlgmr.msra.gmra.mrb[0].mxu0 %v6694_v53 }
  0xb0   : > { %5762 = vmatpush3.bf16.msra.mxu0 %v6617_v15  ;;  %4994 = vmatprep.mubr.f32.mxu0 %v6696_v55  ;;  %v7124_v15 = vld [vmem:[%s8074_s3 + $0x10] sm:$0xff] }
  0xb1   : > { %5764 = vmatprep.subr.bf16.mxu0 %v6626_v20  ;;  %v8302_v1 = vand.u32 4294901760, %v7124_v15 }
  0xb3   : > { %4995 = vmatmul.mubr.f32.gmra.mrb[2].mxu0 %v6714_v4  ;;  %v7297_v57 = vsub.f32 %v7124_v15, %v8302_v1 }
  0xb4   : > { %4997 = vmatprep.mubr.f32.mxu0 %v6716_v5  ;;  %5766 = vmatpush3.bf16.msra.mxu0 %v6626_v20  ;;  %v7129_v20 = vld [vmem:[%s8074_s3 + $0x18] sm:$0xff] }
  0xb5   : > { %5768 = vmatprep.subr.bf16.mxu0 %v6632_v23  ;;  %v8303_v56 = vand.u32 4294901760, %v7129_v20 }
  0xb7   : > { %4998 = vmatmul.mubr.f32.gmra.mrb[4].mxu0 %v6729_v10  ;;  %v7302_v40 = vsub.f32 %v7129_v20, %v8303_v56  ;;  %v8305_v56 = vand.u32 4294901760, %v7147_v39 }
  0xb8   : > { %5000 = vmatprep.mubr.f32.mxu0 %v6755_v43  ;;  %5770 = vmatpush3.bf16.msra.mxu0 %v6632_v23  ;;  %v8138_v23 = vand.u32 4294901760, %v7124_v15  ;;  %v8304_v15 = vand.u32 4294901760, %v7142_v14 }
  0xb9   : > { %5772 = vmatprep.subr.bf16.mxu0 %v6642_v27 }
  0xbb   : > { %5001 = vmatmul.mubr.f32.gmra.mrb[6].mxu0 %v6757_v44 }
  0xbc   : > { %5003 = vmatprep.mubr.f32.mxu0 %v6803_v34  ;;  %5774 = vmatpush3.bf16.msra.mxu0 %v6642_v27  ;;  %v8137_v27 = vand.u32 4294901760, %v7129_v20  ;;  %v7319_v20 = vsub.f32 %v7147_v39, %v8305_v56 }
  0xbd   : > { %5776 = vmatprep.subr.bf16.mxu0 %v6654_v31 }
  0xbe   : > { %v1959_v63 = vand.u32 4294901760, %v7319_v20 }
  0xbf   : > { %5004 = vmatmul.mubr.f32.gmra.mrb[8].mxu0 %v6818_v0 }
  0xc0   : > { %5006 = vmatprep.mubr.f32.mxu0 %v6820_v21  ;;  %5778 = vmatpush3.bf16.msra.mxu0 %v6654_v31  ;;  %v7137_v31 = vpack.c.bf16 %v8137_v27, %v8138_v23  ;;  %v7159_v27 = vpack.c.bf16 %v8139_v46, %v8140_v22  ;;  %v7164_v23 = vld [vmem:[%s8074_s3 + $0x30] sm:$0xff]  ;;  %v7186_v22 = vld [vmem:[%s8074_s3 + $0x40] sm:$0xff] }
  0xc1   : > { %5780 = vmatprep.subr.bf16.mxu0 %v7023_v45  ;;  %v8142_v49 = vand.u32 4294901760, %v7164_v23  ;;  %v8144_v38 = vand.u32 4294901760, %v7186_v22 }
  0xc2   : > { %5880 = vmatprep.subr.bf16.mxu1 %v7137_v31 }
  0xc3   : > { %5007 = vmatmul.mubr.f32.gmra.mrb[10].mxu0 %v6840_v13  ;;  %5882 = vmatpush3.bf16.msra.mxu1 %v7137_v31  ;;  %v7181_v46 = vpack.c.bf16 %v8141_v30, %v8142_v49  ;;  %v7203_v30 = vpack.c.bf16 %v8143_v25, %v8144_v38  ;;  %v7208_v49 = vld [vmem:[%s8074_s3 + $0x50] sm:$0xff]  ;;  %v7230_v38 = vld [vmem:[%s8074_s3 + $0x60] sm:$0xff] }
  0xc4   : > { %5009 = vmatprep.mubr.f32.mxu0 %v6859_v58  ;;  %5884 = vmatprep.subr.bf16.mxu1 %v7159_v27  ;;  %v8146_v28 = vand.u32 4294901760, %v7208_v49  ;;  %v8150_v37 = vand.u32 4294901760, %v7230_v38 }
  0xc6   : > { %v7225_v25 = vpack.c.bf16 %v8145_v35, %v8146_v28  ;;  %v7247_v35 = vpack.c.bf16 %v8149_v24, %v8150_v37  ;;  %v7252_v28 = vld [vmem:[%s8074_s3 + $0x70] sm:$0xff]  ;;  %v8300_v37 = vand.u32 4294901760, %v7009_v26 }
  0xc7   : > { %5010 = vmatmul.mubr.f32.gmra.mrb[12].mxu0 %v6861_v16  ;;  %5886 = vmatpush3.bf16.msra.mxu1 %v7159_v27  ;;  %v8152_v50 = vand.u32 4294901760, %v7252_v28 }
  0xc8   : > { %5012 = vmatprep.mubr.f32.mxu0 %v6907_v6  ;;  %5888 = vmatprep.subr.bf16.mxu1 %v7181_v46  ;;  %v7276_v18 = vsub.f32 %v7009_v26, %v8300_v37 }
  0xc9   : > { %v7269_v24 = vpack.c.bf16 %v8151_v9, %v8152_v50  ;;  %v1931_v50 = vand.u32 4294901760, %v7281_v32 }
  0xca   : > { %v1924_v9 = vand.u32 4294901760, %v7276_v18 }
  0xcb   : > { %5013 = vmatmul.mubr.f32.gmra.mrb[14].mxu0 %v6913_v60  ;;  %5890 = vmatpush3.bf16.msra.mxu1 %v7181_v46  ;;  %v1932_v26 = vsub.f32 %v7281_v32, %v1931_v50 }
  0xcc   : > { %5035 = vmatprep.mubr.f32.mxu0 %v6692_v52  ;;  %5892 = vmatprep.subr.bf16.mxu1 %v7203_v30  ;;  %v7287_v19 = vpack.c.bf16 %v1931_v50, %v1924_v9  ;;  %v1925_v17 = vsub.f32 %v7276_v18, %v1924_v9  ;;  %v1938_v50 = vand.u32 4294901760, %v7297_v57  ;;  %v1945_v9 = vand.u32 4294901760, %v7302_v40 }
  0xcd   : > { %v1933_v59 = vand.u32 4294901760, %v1932_v26 }
  0xce   : > { %v1926_v37 = vand.u32 4294901760, %v1925_v17  ;;  %v7307_v17 = vpack.c.bf16 %v1945_v9, %v1938_v50  ;;  %v1946_v26 = vsub.f32 %v7302_v40, %v1945_v9  ;;  %v8306_v9 = vand.u32 4294901760, %v7164_v23 }
  0xcf   : > { %5036 = vmatmul.mubr.f32.vlgmr.msra.gmra.mrb[0].mxu0 %v6694_v53  ;;  %5894 = vmatpush3.bf16.msra.mxu1 %v7203_v30 }
  0xd0   : > { %5038 = vmatprep.mubr.f32.mxu0 %v6696_v55  ;;  %5782 = vmatpush3.bf16.msra.mxu0 %v7023_v45  ;;  %v7292_v29 = vpack.c.bf16 %v1933_v59, %v1926_v37  ;;  %v1939_v59 = vsub.f32 %v7297_v57, %v1938_v50  ;;  %v7314_v37 = vsub.f32 %v7142_v14, %v8304_v15  ;;  %v1947_v12 = vand.u32 4294901760, %v1946_v26 }
  0xd1   : > { %5784 = vmatprep.subr.bf16.mxu0 %v7137_v31  ;;  %5896 = vmatprep.subr.bf16.mxu1 %v7225_v25  ;;  %v1965_v14 = vsub.f32 %v7164_v23, %v8306_v9  ;;  %v8307_v15 = vand.u32 4294901760, %v7169_v8 }
  0xd2   : > { %v1940_v1 = vand.u32 4294901760, %v1939_v59  ;;  %v1952_v11 = vand.u32 4294901760, %v7314_v37  ;;  %v1960_v59 = vsub.f32 %v7319_v20, %v1959_v63 }
  0xd3   : > { %5039 = vmatmul.mubr.f32.gmra.mrb[2].mxu0 %v6714_v4  ;;  %5898 = vmatpush3.bf16.msra.mxu1 %v7225_v25  ;;  %v1972_v61 = vsub.f32 %v7169_v8, %v8307_v15  ;;  %v1966_v56 = vand.u32 4294901760, %v1965_v14  ;;  %v8309_v8 = vand.u32 4294901760, %v7191_v2 }
  0xd4   : > { %5041 = vmatprep.mubr.f32.mxu0 %v6716_v5  ;;  %5786 = vmatpush3.bf16.msra.mxu0 %v7137_v31  ;;  %v7323_v62 = vpack.c.bf16 %v1947_v12, %v1940_v1  ;;  %v1953_v50 = vsub.f32 %v7314_v37, %v1952_v11  ;;  %v7332_v39 = vpack.c.bf16 %v1959_v63, %v1952_v11 }
  0xd5   : > { %5788 = vmatprep.subr.bf16.mxu0 %v7159_v27  ;;  %5900 = vmatprep.subr.bf16.mxu1 %v7247_v35  ;;  %v1967_v1 = vsub.f32 %v1965_v14, %v1966_v56  ;;  %v1986_v11 = vsub.f32 %v7191_v2, %v8309_v8 }
  0xd6   : > { %v1954_v26 = vand.u32 4294901760, %v1953_v50 }
  0xd7   : > { %5042 = vmatmul.mubr.f32.gmra.mrb[4].mxu0 %v6729_v10  ;;  %5902 = vmatpush3.bf16.msra.mxu1 %v7247_v35  ;;  %v1968_v15 = vand.u32 4294901760, %v1967_v1  ;;  %v8315_v10 = vand.u32 4294901760, %v7257_v33 }
  0xd8   : > { %5044 = vmatprep.mubr.f32.mxu0 %v6755_v43  ;;  %5790 = vmatpush3.bf16.msra.mxu0 %v7159_v27 }
  0xd9   : > { %5792 = vmatprep.subr.bf16.mxu0 %v7181_v46  ;;  %5904 = vmatprep.subr.bf16.mxu1 %v7269_v24 }
  0xdb   : > { %5045 = vmatmul.mubr.f32.gmra.mrb[6].mxu0 %v6757_v44  ;;  %5906 = vmatpush3.bf16.msra.mxu1 %v7269_v24 }
  0xdc   : > { %5047 = vmatprep.mubr.f32.mxu0 %v6803_v34  ;;  %5794 = vmatpush3.bf16.msra.mxu0 %v7181_v46  ;;  %v8312_v34 = vand.u32 4294901760, %v7230_v38 }
  0xdd   : > { %5796 = vmatprep.subr.bf16.mxu0 %v7203_v30  ;;  %5908 = vmatprep.subr.bf16.mxu1 %v7287_v19 }
  0xde   : > { %v2007_v44 = vsub.f32 %v7230_v38, %v8312_v34  ;;  %v2028_v34 = vsub.f32 %v7257_v33, %v8315_v10  ;;  %v7383_v10 = vpack.c.bf16 %v7281_v32, %v7276_v18  ;;  %v7387_v33 = vpack.c.bf16 %v7302_v40, %v7297_v57  ;;  %v7406_v32 = vld [vmem:[%s8075_s4] ss:$0 sm:$0xff] }
  0xdf   : > { %5048 = vmatmul.mubr.f32.gmra.mrb[8].mxu0 %v6818_v0  ;;  %v8311_v0 = vand.u32 4294901760, %v7213_v48 }
  0xe0   : > { %5050 = vmatprep.mubr.f32.mxu0 %v6820_v21  ;;  %5798 = vmatpush3.bf16.msra.mxu0 %v7203_v30 }
  0xe1   : > { %5800 = vmatprep.subr.bf16.mxu0 %v7225_v25 }
  0xe3   : > { %5051 = vmatmul.mubr.f32.gmra.mrb[10].mxu0 %v6840_v13  ;;  %v1987_v13 = vand.u32 4294901760, %v1986_v11 }
  0xe4   : > { %5053 = vmatprep.mubr.f32.mxu0 %v6859_v58  ;;  %5802 = vmatpush3.bf16.msra.mxu0 %v7225_v25  ;;  %v8308_v58 = vand.u32 4294901760, %v7186_v22 }
  0xe5   : > { %5804 = vmatprep.subr.bf16.mxu0 %v7247_v35 }
  0xe6   : > { %v1979_v23 = vsub.f32 %v7186_v22, %v8308_v58  ;;  %v2000_v58 = vsub.f32 %v7213_v48, %v8311_v0  ;;  %v1988_v22 = vsub.f32 %v1986_v11, %v1987_v13 }
  0xe7   : > { %5054 = vmatmul.mubr.f32.gmra.mrb[12].mxu0 %v6861_v16 }
  0xe8   : > { %5056 = vmatprep.mubr.f32.mxu0 %v6907_v6  ;;  %5806 = vmatpush3.bf16.msra.mxu0 %v7247_v35  ;;  %v1961_v6 = vand.u32 4294901760, %v1960_v59  ;;  %v1980_v50 = vand.u32 4294901760, %v1979_v23  ;;  %v2001_v1 = vand.u32 4294901760, %v2000_v58 }
  0xe9   : > { %5808 = vmatprep.subr.bf16.mxu0 %v7269_v24 }
  0xea   : > { %v7340_v9 = vpack.c.bf16 %v1961_v6, %v1954_v26  ;;  %v1981_v59 = vsub.f32 %v1979_v23, %v1980_v50  ;;  %v7353_v6 = vpack.c.bf16 %v1987_v13, %v1980_v50  ;;  %v2008_v50 = vand.u32 4294901760, %v2007_v44 }
  0xeb   : > { %5057 = vmatmul.mubr.f32.gmra.mrb[14].mxu0 %v6913_v60  ;;  %v1973_v60 = vand.u32 4294901760, %v1972_v61 }
  0xec   : > { %5810 = vmatpush3.bf16.msra.mxu0 %v7269_v24  ;;  %v1982_v26 = vand.u32 4294901760, %v1981_v59 }
  0xed   : > { %5812 = vmatprep.subr.bf16.mxu0 %v7292_v29  ;;  %v7335_v12 = vpack.c.bf16 %v1973_v60, %v1966_v56  ;;  %v1974_v16 = vsub.f32 %v1972_v61, %v1973_v60  ;;  %v8310_v56 = vand.u32 4294901760, %v7208_v49 }
  0xef   : > { %v1975_v63 = vand.u32 4294901760, %v1974_v16  ;;  %v1993_v60 = vsub.f32 %v7208_v49, %v8310_v56  ;;  %v1989_v16 = vand.u32 4294901760, %v1988_v22  ;;  %v8313_v56 = vand.u32 4294901760, %v7235_v54 }
  0xf0   : > { %v2009_v22 = vsub.f32 %v2007_v44, %v2008_v50 }
  0xf1   : > { %v7345_v21 = vpack.c.bf16 %v1975_v63, %v1968_v15  ;;  %v1994_v2 = vand.u32 4294901760, %v1993_v60  ;;  %v2002_v63 = vsub.f32 %v2000_v58, %v2001_v1  ;;  %v7360_v49 = vpack.c.bf16 %v1989_v16, %v1982_v26 }
  0xf2   : > { %v2014_v0 = vsub.f32 %v7235_v54, %v8313_v56  ;;  %v2010_v16 = vand.u32 4294901760, %v2009_v22  ;;  %v7395_v22 = vpack.c.bf16 %v1986_v11, %v1979_v23 }
  0xf3   : > { %v7355_v8 = vpack.c.bf16 %v2001_v1, %v1994_v2  ;;  %v1995_v15 = vsub.f32 %v1993_v60, %v1994_v2  ;;  %v2003_v13 = vand.u32 4294901760, %v2002_v63  ;;  %v8314_v2 = vand.u32 4294901760, %v7252_v28 }
  0xf4   : > { %v2015_v59 = vand.u32 4294901760, %v2014_v0 }
  0xf5   : > { %v1996_v48 = vand.u32 4294901760, %v1995_v15  ;;  %v2021_v1 = vsub.f32 %v7252_v28, %v8314_v2  ;;  %v2029_v15 = vand.u32 4294901760, %v2028_v34  ;;  %v7397_v2 = vpack.c.bf16 %v2000_v58, %v1993_v60 }
  0xf6   : > { %v7373_v38 = vpack.c.bf16 %v2015_v59, %v2008_v50  ;;  %v2016_v26 = vsub.f32 %v2014_v0, %v2015_v59  ;;  %v7391_v50 = vpack.c.bf16 %v7319_v20, %v7314_v37  ;;  %v7393_v59 = vpack.c.bf16 %v1972_v61, %v1965_v14  ;;  %v7412_v61 = vld [vmem:[%s8076_s5] ss:$0 sm:$0xff] }
  0xf7   : > { %v7365_v43 = vpack.c.bf16 %v2003_v13, %v1996_v48  ;;  %v2022_v54 = vand.u32 4294901760, %v2021_v1  ;;  %v2030_v13 = vsub.f32 %v2028_v34, %v2029_v15 }
  0xf8   : > { %v2017_v63 = vand.u32 4294901760, %v2016_v26 }
  0xf9   : > { %v7375_v56 = vpack.c.bf16 %v2029_v15, %v2022_v54  ;;  %v2023_v48 = vsub.f32 %v2021_v1, %v2022_v54  ;;  %v2031_v55 = vand.u32 4294901760, %v2030_v13 }
  0xfa   : > { %v7377_v5 = vpack.c.bf16 %v2017_v63, %v2010_v16 }
  0xfb   : > { %v2024_v4 = vand.u32 4294901760, %v2023_v48 }
  0xfd   : > { %v7379_v28 = vpack.c.bf16 %v2031_v55, %v2024_v4  ;;  %v7399_v55 = vpack.c.bf16 %v2014_v0, %v2007_v44  ;;  %v7401_v4 = vpack.c.bf16 %v2028_v34, %v2021_v1 }
 0x1a2   : > { %v5037_v40 = vpop.f32.mrb[0].mxu0 }
 0x1a3   : > { %v1578_v57 = vsub.f32 %v5037_v40, %v7406_v32  ;;  %v1476_v18 = vpop.f32.mrb[1].mxu0 }
 0x1a4   : > { %v1577_v37 = vsub.f32 %v1476_v18, %v7406_v32 }
 0x1a5   : > { %v1594_v44 = vmul.f32 %v1578_v57, %v1578_v57 }
 0x1a6   : > { %v1593_v20 = vmul.f32 %v1577_v37, %v1577_v37  ;;  %v5040_v14 = vpop.f32.mrb[2].mxu0 }
 0x1a7   : > { %v1617_v23 = vmul.f32 %v7412_v61, %v1594_v44  ;;  %v1580_v11 = vsub.f32 %v5040_v14, %v7406_v32  ;;  %v1488_v60 = vpop.f32.mrb[3].mxu0 }
 0x1a8   : > { %v1616_v58 = vmul.f32 %v7412_v61, %v1593_v20  ;;  %v1579_v0 = vsub.f32 %v1488_v60, %v7406_v32 }
 0x1a9   : > { %v1634_v1 = vmul.f32 1.442695, %v1617_v23  ;;  %v1596_v34 = vmul.f32 %v1580_v11, %v1580_v11 }
 0x1aa   : > { %v1632_v26 = vmul.f32 1.442695, %v1616_v58  ;;  %v1595_v16 = vmul.f32 %v1579_v0, %v1579_v0  ;;  %v5043_v54 = vpop.f32.mrb[4].mxu0 }
 0x1ab   : > { %6403 = vpow2.f32 %v1634_v1  ;;  %v1619_v15 = vmul.f32 %v7412_v61, %v1596_v34  ;;  %v1582_v63 = vsub.f32 %v5043_v54, %v7406_v32  ;;  %v1500_v48 = vpop.f32.mrb[5].mxu0 }
 0x1ac   : > { %6405 = vpow2.f32 %v1632_v26  ;;  %v1618_v13 = vmul.f32 %v7412_v61, %v1595_v16  ;;  %v1581_v40 = vsub.f32 %v1500_v48, %v7406_v32 }
 0x1ad   : > { %v1638_v57 = vmul.f32 1.442695, %v1619_v15  ;;  %v1598_v18 = vmul.f32 %v1582_v63, %v1582_v63 }
 0x1ae   : > { %v1636_v37 = vmul.f32 1.442695, %v1618_v13  ;;  %v1597_v44 = vmul.f32 %v1581_v40, %v1581_v40  ;;  %v5046_v20 = vpop.f32.mrb[6].mxu0 }
 0x1af   : > { %6407 = vpow2.f32 %v1638_v57  ;;  %v1621_v14 = vmul.f32 %v7412_v61, %v1598_v18  ;;  %v1584_v23 = vsub.f32 %v5046_v20, %v7406_v32  ;;  %v1512_v11 = vpop.f32.mrb[7].mxu0 }
 0x1b0   : > { %6409 = vpow2.f32 %v1636_v37  ;;  %v1620_v60 = vmul.f32 %v7412_v61, %v1597_v44  ;;  %v1583_v58 = vsub.f32 %v1512_v11, %v7406_v32 }
 0x1b1   : > { %v1642_v0 = vmul.f32 1.442695, %v1621_v14  ;;  %v1600_v1 = vmul.f32 %v1584_v23, %v1584_v23 }
 0x1b2   : > { %v1640_v34 = vmul.f32 1.442695, %v1620_v60  ;;  %v1599_v26 = vmul.f32 %v1583_v58, %v1583_v58  ;;  %v5049_v16 = vpop.f32.mrb[8].mxu0 }
 0x1b3   : > { %6411 = vpow2.f32 %v1642_v0  ;;  %v1623_v54 = vmul.f32 %v7412_v61, %v1600_v1  ;;  %v1586_v15 = vsub.f32 %v5049_v16, %v7406_v32  ;;  %v1524_v63 = vpop.f32.mrb[9].mxu0 }
 0x1b4   : > { %6413 = vpow2.f32 %v1640_v34  ;;  %v1622_v48 = vmul.f32 %v7412_v61, %v1599_v26  ;;  %v1585_v13 = vsub.f32 %v1524_v63, %v7406_v32 }
 0x1b5   : > { %v6404_v40 = vpop.eup %6403  ;;  %v1646_v57 = vmul.f32 1.442695, %v1623_v54  ;;  %v1602_v18 = vmul.f32 %v1586_v15, %v1586_v15 }
 0x1b6   : > { %v6406_v37 = vpop.eup %6405  ;;  %v7431_v44 = vand.u32 4294901760, %v6404_v40  ;;  %v1644_v20 = vmul.f32 1.442695, %v1622_v48  ;;  %v1601_v14 = vmul.f32 %v1585_v13, %v1585_v13  ;;  %v5052_v23 = vpop.f32.mrb[10].mxu0 }
 0x1b7   : > { %6415 = vpow2.f32 %v1646_v57  ;;  %v1625_v11 = vmul.f32 %v7412_v61, %v1602_v18  ;;  %v1588_v60 = vsub.f32 %v5052_v23, %v7406_v32  ;;  %v1536_v58 = vpop.f32.mrb[11].mxu0  ;;  %v7435_v0 = vand.u32 4294901760, %v6406_v37 }
 0x1b8   : > { %6417 = vpow2.f32 %v1644_v20  ;;  %v1624_v1 = vmul.f32 %v7412_v61, %v1601_v14  ;;  %v1587_v34 = vsub.f32 %v1536_v58, %v7406_v32  ;;  %v7440_v26 = vsub.f32 %v6404_v40, %v7431_v44 }
 0x1b9   : > { %v6408_v16 = vpop.eup %6407  ;;  %v1650_v54 = vmul.f32 1.442695, %v1625_v11  ;;  %v1604_v15 = vmul.f32 %v1588_v60, %v1588_v60  ;;  %v7443_v63 = vsub.f32 %v6406_v37, %v7435_v0 }
 0x1ba   : > { %v6410_v48 = vpop.eup %6409  ;;  %v7445_v13 = vand.u32 4294901760, %v6408_v16  ;;  %v1648_v57 = vmul.f32 1.442695, %v1624_v1  ;;  %v1603_v18 = vmul.f32 %v1587_v34, %v1587_v34  ;;  %v5055_v23 = vpop.f32.mrb[12].mxu0  ;;  %v1773_v20 = vand.u32 4294901760, %v7440_v26 }
 0x1bb   : > { %v7448_v14 = vand.u32 4294901760, %v6410_v48  ;;  %6419 = vpow2.f32 %v1650_v54  ;;  %v1627_v40 = vmul.f32 %v7412_v61, %v1604_v15  ;;  %v1590_v58 = vsub.f32 %v5055_v23, %v7406_v32  ;;  %v1548_v11 = vpop.f32.mrb[13].mxu0 }
 0x1bc   : > { %6421 = vpow2.f32 %v1648_v57  ;;  %v1626_v37 = vmul.f32 %v7412_v61, %v1603_v18  ;;  %v1589_v60 = vsub.f32 %v1548_v11, %v7406_v32  ;;  %v1763_v53 = vand.u32 4294901760, %v7443_v63 }
 0x1bd   : > { %v6412_v1 = vpop.eup %6411  ;;  %v1654_v34 = vmul.f32 1.442695, %v1627_v40  ;;  %v1606_v52 = vmul.f32 %v1590_v58, %v1590_v58  ;;  %v1774_v36 = vsub.f32 %v7440_v26, %v1773_v20  ;;  %v7457_v41 = vsub.f32 %v6410_v48, %v7448_v14 }
 0x1be   : > { %v6414_v54 = vpop.eup %6413  ;;  %v7459_v15 = vand.u32 4294901760, %v6412_v1  ;;  %v1652_v23 = vmul.f32 1.442695, %v1626_v37  ;;  %v1605_v51 = vmul.f32 %v1589_v60, %v1589_v60  ;;  %v1764_v57 = vsub.f32 %v7443_v63, %v1763_v53  ;;  %5259 = vmatprep.mubr.f32.mxu1 %v1763_v53  ;;  %v5058_v18 = vpop.f32.mrb[14].mxu0 }
 0x1bf   : > { %v7462_v11 = vand.u32 4294901760, %v6414_v54  ;;  %6423 = vpow2.f32 %v1654_v34  ;;  %v1629_v40 = vmul.f32 %v7412_v61, %v1606_v52  ;;  %v1592_v58 = vsub.f32 %v5058_v18, %v7406_v32  ;;  %5260 = vmatmul.mubr.f32.vlgmr.msra.gmra.mrb[0].mxu1 %v1773_v20  ;;  %v1560_v7 = vpop.f32.mrb[15].mxu0 }
 0x1c0   : > { %6425 = vpow2.f32 %v1652_v23  ;;  %v1628_v48 = vmul.f32 %v7412_v61, %v1605_v51  ;;  %v1775_v3 = vand.u32 4294901760, %v1774_v36  ;;  %v1591_v37 = vsub.f32 %v1560_v7, %v7406_v32  ;;  %5910 = vmatpush3.bf16.msra.mxu1 %v7287_v19 }
 0x1c1   : > { %v6416_v60 = vpop.eup %6415  ;;  %v1658_v53 = vmul.f32 1.442695, %v1629_v40  ;;  %v1608_v47 = vmul.f32 %v1592_v58, %v1592_v58  ;;  %v1765_v42 = vand.u32 4294901760, %v1764_v57  ;;  %v1783_v34 = vand.u32 4294901760, %v7457_v41  ;;  %5912 = vmatprep.subr.bf16.mxu1 %v7307_v17 }
 0x1c2   : > { %v6418_v52 = vpop.eup %6417  ;;  %v7471_v18 = vand.u32 4294901760, %v6416_v60  ;;  %v1656_v20 = vmul.f32 1.442695, %v1628_v48  ;;  %v1607_v23 = vmul.f32 %v1591_v37, %v1591_v37  ;;  %v7474_v51 = vsub.f32 %v6408_v16, %v7445_v13 }
 0x1c3   : > { %v7476_v36 = vand.u32 4294901760, %v6418_v52  ;;  %6427 = vpow2.f32 %v1658_v53  ;;  %v1631_v7 = vmul.f32 %v7412_v61, %v1608_v47  ;;  %5091 = vmatprep.mubr.f32.mxu0 %v1765_v42  ;;  %5262 = vmatprep.mubr.f32.mxu1 %v1783_v34  ;;  %v1784_v19 = vsub.f32 %v7457_v41, %v1783_v34 }
 0x1c4   : > { %6429 = vpow2.f32 %v1656_v20  ;;  %v1630_v32 = vmul.f32 %v7412_v61, %v1607_v23  ;;  %5092 = vmatmul.mubr.f32.vlgmr.msra.gmra.mrb[16].mxu0 %v1775_v3  ;;  %v1793_v57 = vand.u32 4294901760, %v7474_v51  ;;  %5914 = vmatpush3.bf16.msra.mxu1 %v7307_v17  ;;  %v7484_v16 = vsub.f32 %v6414_v54, %v7462_v11 }
 0x1c5   : > { %v6420_v40 = vpop.eup %6419  ;;  %v1662_v58 = vmul.f32 1.442695, %v1631_v7  ;;  %5814 = vmatpush3.bf16.msra.mxu0 %v7292_v29  ;;  %v1785_v47 = vand.u32 4294901760, %v1784_v19  ;;  %v7488_v42 = vsub.f32 %v6412_v1, %v7459_v15  ;;  %5916 = vmatprep.subr.bf16.mxu1 %v7332_v39  ;;  %v7492_v61 = vsub.f32 %v6418_v52, %v7476_v36 }
 0x1c6   : > { %v6422_v3 = vpop.eup %6421  ;;  %v7494_v48 = vand.u32 4294901760, %v6420_v40  ;;  %v1660_v17 = vmul.f32 1.442695, %v1630_v32  ;;  %5263 = vmatmul.mubr.f32.gmra.mrb[2].mxu1 %v1793_v57  ;;  %v1803_v54 = vand.u32 4294901760, %v7484_v16  ;;  %v1794_v37 = vsub.f32 %v7474_v51, %v1793_v57  ;;  %5816 = vmatprep.subr.bf16.mxu0 %v7323_v62 }
 0x1c7   : > { %v7499_v29 = vand.u32 4294901760, %v6422_v3  ;;  %6431 = vpow2.f32 %v1662_v58  ;;  %5094 = vmatprep.mubr.f32.mxu0 %v1785_v47  ;;  %v1813_v1 = vand.u32 4294901760, %v7488_v42  ;;  %v1823_v53 = vand.u32 4294901760, %v7492_v61 }
 0x1c8   : > { %6433 = vpow2.f32 %v1660_v17  ;;  %5265 = vmatprep.mubr.f32.mxu1 %v1803_v54  ;;  %v1795_v34 = vand.u32 4294901760, %v1794_v37  ;;  %5918 = vmatpush3.bf16.msra.mxu1 %v7332_v39  ;;  %v1804_v52 = vsub.f32 %v7484_v16, %v1803_v54  ;;  %v7506_v20 = vsub.f32 %v6416_v60, %v7471_v18 }
 0x1c9   : > { %v6424_v23 = vpop.eup %6423  ;;  %5818 = vmatpush3.bf16.msra.mxu0 %v7323_v62  ;;  %v1814_v7 = vsub.f32 %v7488_v42, %v1813_v1  ;;  %5920 = vmatprep.subr.bf16.mxu1 %v7335_v12  ;;  %v1824_v19 = vsub.f32 %v7492_v61, %v1823_v53  ;;  %v7513_v32 = vsub.f32 %v6422_v3, %v7499_v29 }
 0x1ca   : > { %8316 = vst [vmem:[#allocation69_spill] sm:$0xff] %v7506_v20  ;;  %v6426_v57 = vpop.eup %6425  ;;  %v7515_v58 = vand.u32 4294901760, %v6424_v23  ;;  %5095 = vmatmul.mubr.f32.gmra.mrb[18].mxu0 %v1795_v34  ;;  %5266 = vmatmul.mubr.f32.gmra.mrb[4].mxu1 %v1813_v1  ;;  %v1805_v39 = vand.u32 4294901760, %v1804_v52  ;;  %v1833_v60 = vand.u32 4294901760, %v7506_v20  ;;  %v7519_v47 = vsub.f32 %v6420_v40, %v7494_v48 }
 0x1cb   : > { %8317 = vst [vmem:[#allocation70_spill] sm:$0xff] %v7513_v32  ;;  %v7521_v62 = vand.u32 4294901760, %v6426_v57  ;;  %5268 = vmatprep.mubr.f32.mxu1 %v1823_v53  ;;  %5820 = vmatprep.subr.bf16.mxu0 %v7340_v9  ;;  %v1825_v17 = vand.u32 4294901760, %v1824_v19  ;;  %v1843_v3 = vand.u32 4294901760, %v7513_v32  ;;  %v1815_v54 = vand.u32 4294901760, %v1814_v7 }
 0x1cc   : > { %8318 = vst [vmem:[#allocation71_spill] sm:$0xff] %v7519_v47  ;;  %5097 = vmatprep.mubr.f32.mxu0 %v1805_v39  ;;  %5922 = vmatpush3.bf16.msra.mxu1 %v7335_v12  ;;  %v1834_v37 = vsub.f32 %v7506_v20, %v1833_v60  ;;  %v1853_v1 = vand.u32 4294901760, %v7519_v47  ;;  %v7529_v34 = vsub.f32 %v6424_v23, %v7515_v58 }
 0x1cd   : > { %v6428_v40 = vpop.eup %6427  ;;  %5822 = vmatpush3.bf16.msra.mxu0 %v7340_v9  ;;  %5924 = vmatprep.subr.bf16.mxu1 %v7353_v6  ;;  %v1844_v53 = vsub.f32 %v7513_v32, %v1843_v3  ;;  %v7535_v52 = vsub.f32 %v6426_v57, %v7521_v62 }
 0x1ce   : > { %v6430_v7 = vpop.eup %6429  ;;  %v7537_v19 = vand.u32 4294901760, %v6428_v40  ;;  %5098 = vmatmul.mubr.f32.gmra.mrb[20].mxu0 %v1815_v54  ;;  %5269 = vmatmul.mubr.f32.gmra.mrb[6].mxu1 %v1833_v60  ;;  %v1835_v9 = vand.u32 4294901760, %v1834_v37  ;;  %v1854_v57 = vsub.f32 %v7519_v47, %v1853_v1  ;;  %v1873_v32 = vand.u32 4294901760, %v7529_v34 }
 0x1cf   : > { %8319 = vst [vmem:[#allocation72_spill] sm:$0xff] %v7535_v52  ;;  %v7539_v12 = vand.u32 4294901760, %v6430_v7  ;;  %5100 = vmatprep.mubr.f32.mxu0 %v1825_v17  ;;  %5271 = vmatprep.mubr.f32.mxu1 %v1843_v3  ;;  %v1845_v23 = vand.u32 4294901760, %v1844_v53  ;;  %v1863_v39 = vand.u32 4294901760, %v7535_v52 }
 0x1d0   : > { %5824 = vmatprep.subr.bf16.mxu0 %v7345_v21  ;;  %5926 = vmatpush3.bf16.msra.mxu1 %v7353_v6  ;;  %v7547_v20 = vsub.f32 %v6428_v40, %v7537_v19 }
 0x1d1   : > { %v6432_v60 = vpop.eup %6431  ;;  %5826 = vmatpush3.bf16.msra.mxu0 %v7345_v21  ;;  %5928 = vmatprep.subr.bf16.mxu1 %v7355_v8  ;;  %v1864_v17 = vsub.f32 %v7535_v52, %v1863_v39  ;;  %v7553_v3 = vsub.f32 %v6430_v7, %v7539_v12  ;;  %v1855_v21 = vand.u32 4294901760, %v1854_v57  ;;  %v1874_v7 = vsub.f32 %v7529_v34, %v1873_v32 }
 0x1d2   : > { %v6434_v54 = vpop.eup %6433  ;;  %v7555_v37 = vand.u32 4294901760, %v6432_v60  ;;  %5101 = vmatmul.mubr.f32.gmra.mrb[22].mxu0 %v1835_v9  ;;  %5272 = vmatmul.mubr.f32.gmra.mrb[8].mxu1 %v1853_v1  ;;  %v1893_v52 = vand.u32 4294901760, %v7547_v20 }
 0x1d3   : > { %v7557_v6 = vand.u32 4294901760, %v6434_v54  ;;  %5103 = vmatprep.mubr.f32.mxu0 %v1845_v23  ;;  %5274 = vmatprep.mubr.f32.mxu1 %v1863_v39  ;;  %v1865_v40 = vand.u32 4294901760, %v1864_v17  ;;  %v1883_v53 = vand.u32 4294901760, %v7553_v3  ;;  %v1875_v9 = vand.u32 4294901760, %v1874_v7 }
 0x1d4   : > { %5828 = vmatprep.subr.bf16.mxu0 %v7360_v49  ;;  %5930 = vmatpush3.bf16.msra.mxu1 %v7355_v8  ;;  %v7565_v47 = vsub.f32 %v6432_v60, %v7555_v37 }
 0x1d5   : > { %5830 = vmatpush3.bf16.msra.mxu0 %v7360_v49  ;;  %5932 = vmatprep.subr.bf16.mxu1 %v7373_v38  ;;  %v1884_v1 = vsub.f32 %v7553_v3, %v1883_v53  ;;  %v7571_v23 = vsub.f32 %v6434_v54, %v7557_v6  ;;  %v1894_v49 = vsub.f32 %v7547_v20, %v1893_v52  ;;  %v7675_v54 = vld [vmem:[%s8072_s1 + $0x28] sm:$0xff] }
 0x1d6   : > { %5104 = vmatmul.mubr.f32.gmra.mrb[24].mxu0 %v1855_v21  ;;  %5275 = vmatmul.mubr.f32.gmra.mrb[10].mxu1 %v1873_v32  ;;  %v1913_v57 = vand.u32 4294901760, %v7565_v47  ;;  %v7689_v21 = vld [vmem:[%s8072_s1 + $0x30] sm:$0xff] }
 0x1d7   : > { %5106 = vmatprep.mubr.f32.mxu0 %v1865_v40  ;;  %5277 = vmatprep.mubr.f32.mxu1 %v1883_v53  ;;  %v1885_v8 = vand.u32 4294901760, %v1884_v1  ;;  %v1903_v39 = vand.u32 4294901760, %v7571_v23  ;;  %v1895_v17 = vand.u32 4294901760, %v1894_v49  ;;  %v2982_v53 = vand.u32 4294901760, %v7675_v54 }
 0x1d8   : > { %5832 = vmatprep.subr.bf16.mxu0 %v7365_v43  ;;  %5934 = vmatpush3.bf16.msra.mxu1 %v7373_v38  ;;  %v1914_v38 = vsub.f32 %v7565_v47, %v1913_v57 }
 0x1d9   : > { %5834 = vmatpush3.bf16.msra.mxu0 %v7365_v43  ;;  %5936 = vmatprep.subr.bf16.mxu1 %v7375_v56  ;;  %v1904_v32 = vsub.f32 %v7571_v23, %v1903_v39 }
 0x1da   : > { %5107 = vmatmul.mubr.f32.gmra.mrb[26].mxu0 %v1875_v9  ;;  %5278 = vmatmul.mubr.f32.gmra.mrb[12].mxu1 %v1893_v52  ;;  %v1915_v43 = vand.u32 4294901760, %v1914_v38 }
 0x1db   : > { %5109 = vmatprep.mubr.f32.mxu0 %v1885_v8  ;;  %5280 = vmatprep.mubr.f32.mxu1 %v1903_v39  ;;  %v1905_v60 = vand.u32 4294901760, %v1904_v32  ;;  %v2985_v8 = vand.u32 4294901760, %v7689_v21  ;;  %v8320_v32 = vld [vmem:[#allocation69_spill] sm:$0xff] }
 0x1dc   : > { %5836 = vmatprep.subr.bf16.mxu0 %v7377_v5  ;;  %5938 = vmatpush3.bf16.msra.mxu1 %v7375_v56  ;;  %v294_v56 = vld [vmem:[%s8072_s1 + $0x8] sm:$0xff] }
 0x1dd   : > { %5838 = vmatpush3.bf16.msra.mxu0 %v7377_v5  ;;  %6091 = vmatprep.subr.bf16.mxu1 %v7023_v45  ;;  %v293_v5 = vld [vmem:[%s8072_s1] sm:$0xff] }
 0x1de   : > { %5110 = vmatmul.mubr.f32.gmra.mrb[28].mxu0 %v1895_v17  ;;  %5281 = vmatmul.mubr.f32.gmra.mrb[14].mxu1 %v1913_v57  ;;  %v7788_v17 = vsub.f32 %v7689_v21, %v2985_v8 }
 0x1df   : > { %5315 = vmatprep.mubr.f32.mxu1 %v7435_v0  ;;  %5112 = vmatprep.mubr.f32.mxu0 %v1905_v60 }
 0x1e0   : > { %5840 = vmatprep.subr.bf16.mxu0 %v7379_v28 }
 0x1e1   : > { %5842 = vmatpush3.bf16.msra.mxu0 %v7379_v28  ;;  %v2967_v28 = vand.u32 4294901760, %v293_v5 }
 0x1e2   : > { %5113 = vmatmul.mubr.f32.gmra.mrb[30].mxu0 %v1915_v43  ;;  %5316 = vmatmul.mubr.f32.vlgmr.msra.gmra.mrb[0].mxu1 %v7431_v44  ;;  %v8323_v43 = vld [vmem:[#allocation72_spill] sm:$0xff] }
 0x1e3   : > { %5147 = vmatprep.mubr.f32.mxu0 %v7435_v0  ;;  %5318 = vmatprep.mubr.f32.mxu1 %v7448_v14  ;;  %v7696_v7 = vsub.f32 %v293_v5, %v2967_v28 }
 0x1e4   : > { %6099 = vmatpush3.bf16.msra.mxu1 %v7023_v45  ;;  %5844 = vmatprep.subr.bf16.mxu0 %v7383_v10 }
 0x1e5   : > { %6092 = vmatprep.subr.bf16.mxu1 %v7137_v31 }
 0x1e6   : > { %5148 = vmatmul.mubr.f32.vlgmr.msra.gmra.mrb[16].mxu0 %v7431_v44  ;;  %5319 = vmatmul.mubr.f32.gmra.mrb[2].mxu1 %v7445_v13 }
 0x1e7   : > { %5150 = vmatprep.mubr.f32.mxu0 %v7448_v14  ;;  %5846 = vmatpush3.bf16.msra.mxu0 %v7383_v10  ;;  %v2970_v10 = vand.u32 4294901760, %v294_v56 }
 0x1e8   : > { %5321 = vmatprep.mubr.f32.mxu1 %v7462_v11  ;;  %6100 = vmatpush3.bf16.msra.mxu1 %v7137_v31 }
 0x1e9   : > { %5848 = vmatprep.subr.bf16.mxu0 %v7387_v33  ;;  %6093 = vmatprep.subr.bf16.mxu1 %v7159_v27  ;;  %v7698_v1 = vsub.f32 %v294_v56, %v2970_v10 }
 0x1ea   : > { %5151 = vmatmul.mubr.f32.gmra.mrb[18].mxu0 %v7445_v13  ;;  %5322 = vmatmul.mubr.f32.gmra.mrb[4].mxu1 %v7459_v15 }
 0x1eb   : > { %5153 = vmatprep.mubr.f32.mxu0 %v7462_v11  ;;  %5850 = vmatpush3.bf16.msra.mxu0 %v7387_v33  ;;  %v7646_v33 = vld [vmem:[%s8072_s1 + $0x10] sm:$0xff] }
 0x1ec   : > { %5324 = vmatprep.mubr.f32.mxu1 %v7476_v36  ;;  %6101 = vmatpush3.bf16.msra.mxu1 %v7159_v27 }
 0x1ed   : > { %5852 = vmatprep.subr.bf16.mxu0 %v7391_v50  ;;  %6094 = vmatprep.subr.bf16.mxu1 %v7181_v46 }
 0x1ee   : > { %5154 = vmatmul.mubr.f32.gmra.mrb[20].mxu0 %v7459_v15  ;;  %5325 = vmatmul.mubr.f32.gmra.mrb[6].mxu1 %v7471_v18 }
 0x1ef   : > { %5156 = vmatprep.mubr.f32.mxu0 %v7476_v36  ;;  %5854 = vmatpush3.bf16.msra.mxu0 %v7391_v50  ;;  %v7651_v50 = vld [vmem:[%s8072_s1 + $0x18] sm:$0xff] }
 0x1f0   : > { %5327 = vmatprep.mubr.f32.mxu1 %v7499_v29  ;;  %6102 = vmatpush3.bf16.msra.mxu1 %v7181_v46  ;;  %v2976_v52 = vand.u32 4294901760, %v7651_v50 }
 0x1f1   : > { %5856 = vmatprep.subr.bf16.mxu0 %v7393_v59  ;;  %6095 = vmatprep.subr.bf16.mxu1 %v7203_v30 }
 0x1f2   : > { %5157 = vmatmul.mubr.f32.gmra.mrb[22].mxu0 %v7471_v18  ;;  %5328 = vmatmul.mubr.f32.gmra.mrb[8].mxu1 %v7494_v48  ;;  %v7752_v49 = vsub.f32 %v7651_v50, %v2976_v52  ;;  %v8324_v50 = vld [vmem:[#allocation24_spill] sm:$0xff] }
 0x1f3   : > { %5159 = vmatprep.mubr.f32.mxu0 %v7499_v29  ;;  %5858 = vmatpush3.bf16.msra.mxu0 %v7393_v59  ;;  %v7659_v59 = vpack.c.bf16 %v2970_v10, %v2967_v28  ;;  %v3246_v10 = vand.u32 4294901760, %v7788_v17 }
 0x1f4   : > { %5330 = vmatprep.mubr.f32.mxu1 %v7521_v62  ;;  %6103 = vmatpush3.bf16.msra.mxu1 %v7203_v30 }
 0x1f5   : > { %5860 = vmatprep.subr.bf16.mxu0 %v7395_v22  ;;  %6096 = vmatprep.subr.bf16.mxu1 %v7225_v25 }
 0x1f6   : > { %5160 = vmatmul.mubr.f32.gmra.mrb[24].mxu0 %v7494_v48  ;;  %5331 = vmatmul.mubr.f32.gmra.mrb[10].mxu1 %v7515_v58 }
 0x1f7   : > { %5162 = vmatprep.mubr.f32.mxu0 %v7521_v62  ;;  %5862 = vmatpush3.bf16.msra.mxu0 %v7395_v22  ;;  %v2973_v22 = vand.u32 4294901760, %v7646_v33 }
 0x1f8   : > { %5333 = vmatprep.mubr.f32.mxu1 %v7539_v12  ;;  %6104 = vmatpush3.bf16.msra.mxu1 %v7225_v25 }
 0x1f9   : > { %5864 = vmatprep.subr.bf16.mxu0 %v7397_v2  ;;  %6097 = vmatprep.subr.bf16.mxu1 %v7247_v35  ;;  %v7681_v40 = vpack.c.bf16 %v2976_v52, %v2973_v22  ;;  %v3247_v52 = vsub.f32 %v7788_v17, %v3246_v10 }
 0x1fa   : > { %5163 = vmatmul.mubr.f32.gmra.mrb[26].mxu0 %v7515_v58  ;;  %5334 = vmatmul.mubr.f32.gmra.mrb[12].mxu1 %v7537_v19 }
 0x1fb   : > { %5165 = vmatprep.mubr.f32.mxu0 %v7539_v12  ;;  %5866 = vmatpush3.bf16.msra.mxu0 %v7397_v2  ;;  %v7670_v2 = vld [vmem:[%s8072_s1 + $0x20] sm:$0xff] }
 0x1fc   : > { %5336 = vmatprep.mubr.f32.mxu1 %v7557_v6  ;;  %6105 = vmatpush3.bf16.msra.mxu1 %v7247_v35 }
 0x1fd   : > { %5868 = vmatprep.subr.bf16.mxu0 %v7399_v55  ;;  %6098 = vmatprep.subr.bf16.mxu1 %v7269_v24 }
 0x1fe   : > { %5166 = vmatmul.mubr.f32.gmra.mrb[28].mxu0 %v7537_v19  ;;  %5337 = vmatmul.mubr.f32.gmra.mrb[14].mxu1 %v7555_v37 }
 0x1ff   : > { %5168 = vmatprep.mubr.f32.mxu0 %v7557_v6  ;;  %5870 = vmatpush3.bf16.msra.mxu0 %v7399_v55  ;;  %v2979_v55 = vand.u32 4294901760, %v7670_v2 }
 0x200   : > { %6106 = vmatpush3.bf16.msra.mxu1 %v7269_v24  ;;  %5374 = vmatprep.mubr.f32.mxu1 %v7448_v14  ;;  %v7694_v14 = vld [vmem:[%s8072_s1 + $0x38] sm:$0xff] }
 0x201   : > { %5872 = vmatprep.subr.bf16.mxu0 %v7401_v4  ;;  %5972 = vmatprep.subr.bf16.mxu1 %v7659_v59  ;;  %v2988_v39 = vand.u32 4294901760, %v7694_v14  ;;  %v7710_v9 = vpack.c.bf16 %v2982_v53, %v2979_v55  ;;  %v7767_v57 = vsub.f32 %v7670_v2, %v2979_v55  ;;  %v8326_v55 = vld [vmem:[#allocation29_spill] sm:$0xff] }
 0x202   : > { %5169 = vmatmul.mubr.f32.gmra.mrb[30].mxu0 %v7555_v37 }
 0x203   : > { %5375 = vmatmul.mubr.f32.vlgmr.msra.gmra.mrb[2].mxu1 %v7445_v13  ;;  %5874 = vmatpush3.bf16.msra.mxu0 %v7401_v4  ;;  %v3204_v4 = vand.u32 4294901760, %v7696_v7  ;;  %v7719_v13 = vld [vmem:[%s8072_s1 + $0x40] sm:$0xff]  ;;  %v7793_v38 = vsub.f32 %v7694_v14, %v2988_v39 }
 0x204   : > { %5203 = vmatprep.mubr.f32.mxu0 %v7443_v63  ;;  %5377 = vmatprep.mubr.f32.mxu1 %v7462_v11  ;;  %v3211_v63 = vand.u32 4294901760, %v7698_v1 }
 0x205   : > { %5974 = vmatpush3.bf16.msra.mxu1 %v7659_v59  ;;  %5940 = vmatprep.subr.bf16.mxu0 %v7023_v45 }
 0x206   : > { %5204 = vmatmul.mubr.f32.vlgmr.msra.gmra.mrb[16].mxu0 %v7440_v26  ;;  %5976 = vmatprep.subr.bf16.mxu1 %v7681_v40  ;;  %v7724_v26 = vld [vmem:[%s8072_s1 + $0x48] sm:$0xff] }
 0x207   : > { %5378 = vmatmul.mubr.f32.gmra.mrb[4].mxu1 %v7459_v15  ;;  %5206 = vmatprep.mubr.f32.mxu0 %v7457_v41  ;;  %v7730_v15 = vpack.c.bf16 %v2988_v39, %v2985_v8  ;;  %v2991_v41 = vand.u32 4294901760, %v7719_v13  ;;  %v2994_v11 = vand.u32 4294901760, %v7724_v26  ;;  %v8328_v8 = vld [vmem:[#allocation33_spill] sm:$0xff] }
 0x208   : > { %5942 = vmatpush3.bf16.msra.mxu0 %v7023_v45  ;;  %5380 = vmatprep.mubr.f32.mxu1 %v7476_v36  ;;  %v3205_v45 = vsub.f32 %v7696_v7, %v3204_v4  ;;  %v3212_v36 = vsub.f32 %v7698_v1, %v3211_v63 }
 0x209   : > { %5978 = vmatpush3.bf16.msra.mxu1 %v7681_v40  ;;  %5944 = vmatprep.subr.bf16.mxu0 %v7137_v31 }
 0x20a   : > { %5207 = vmatmul.mubr.f32.gmra.mrb[18].mxu0 %v7474_v51  ;;  %5980 = vmatprep.subr.bf16.mxu1 %v7710_v9  ;;  %v7749_v51 = vsub.f32 %v7646_v33, %v2973_v22  ;;  %v7813_v33 = vsub.f32 %v7724_v26, %v2994_v11  ;;  %v8329_v26 = vld [vmem:[#allocation35_spill] sm:$0xff] }
 0x20b   : > { %5381 = vmatmul.mubr.f32.gmra.mrb[6].mxu1 %v7471_v18  ;;  %5209 = vmatprep.mubr.f32.mxu0 %v7484_v16  ;;  %v7756_v18 = vpack.c.bf16 %v2994_v11, %v2991_v41  ;;  %v3206_v16 = vand.u32 4294901760, %v3205_v45  ;;  %v8331_v45 = vld [vmem:[#allocation49_spill] sm:$0xff] }
 0x20c   : > { %5946 = vmatpush3.bf16.msra.mxu0 %v7137_v31  ;;  %5383 = vmatprep.mubr.f32.mxu1 %v7499_v29  ;;  %v3213_v31 = vand.u32 4294901760, %v3212_v36  ;;  %v3225_v29 = vand.u32 4294901760, %v7752_v49  ;;  %v8333_v36 = vld [vmem:[#allocation57_spill] sm:$0xff] }
 0x20d   : > { %5948 = vmatprep.subr.bf16.mxu0 %v7159_v27  ;;  %5982 = vmatpush3.bf16.msra.mxu1 %v7710_v9 }
 0x20e   : > { %5210 = vmatmul.mubr.f32.gmra.mrb[20].mxu0 %v7488_v42  ;;  %5984 = vmatprep.subr.bf16.mxu1 %v7730_v15  ;;  %v3218_v42 = vand.u32 4294901760, %v7749_v51  ;;  %v3226_v60 = vsub.f32 %v7752_v49, %v3225_v29 }
 0x20f   : > { %5384 = vmatmul.mubr.f32.gmra.mrb[8].mxu1 %v7494_v48  ;;  %5212 = vmatprep.mubr.f32.mxu0 %v7492_v61  ;;  %v5991_v61 = vpack.c.bf16 %v3213_v31, %v3206_v16  ;;  %v8321_v48 = vld [vmem:[#allocation70_spill] sm:$0xff]  ;;  %v8334_v16 = vld [vmem:[#allocation59_spill] sm:$0xff]  ;;  %v8336_v31 = vld [vmem:[#allocation65_spill] sm:$0xff] }
 0x210   : > { %5950 = vmatpush3.bf16.msra.mxu0 %v7159_v27  ;;  %5386 = vmatprep.mubr.f32.mxu1 %v7521_v62  ;;  %v7772_v27 = vsub.f32 %v7675_v54, %v2982_v53  ;;  %v3219_v62 = vsub.f32 %v7749_v51, %v3218_v42  ;;  %v3227_v56 = vand.u32 4294901760, %v3226_v60  ;;  %v8325_v54 = vld [vmem:[#allocation25_spill] sm:$0xff]  ;;  %v6015_v60 = vpack.c.bf16 %v7752_v49, %v7749_v51  ;;  %v8377_v49 = vld [vmem:[#allocation26_spill] sm:$0xff] }
 0x211   : > { %5952 = vmatprep.subr.bf16.mxu0 %v7181_v46  ;;  %5986 = vmatpush3.bf16.msra.mxu1 %v7730_v15 }
 0x212   : > { %5213 = vmatmul.mubr.f32.gmra.mrb[22].mxu0 %v8320_v32  ;;  %5988 = vmatprep.subr.bf16.mxu1 %v7756_v18  ;;  %v3220_v5 = vand.u32 4294901760, %v3219_v62  ;;  %v8337_v32 = vld [vmem:[#allocation66_spill] sm:$0xff]  ;;  %v8340_v62 = vld [vmem:[#allocation5_spill] sm:$0xff] }
 0x213   : > { %5387 = vmatmul.mubr.f32.gmra.mrb[10].mxu1 %v7515_v58  ;;  %5215 = vmatprep.mubr.f32.mxu0 %v8321_v48  ;;  %v3232_v58 = vand.u32 4294901760, %v7767_v57  ;;  %v8339_v48 = vld [vmem:[#allocation68_spill] sm:$0xff] }
 0x214   : > { %5954 = vmatpush3.bf16.msra.mxu0 %v7181_v46  ;;  %5389 = vmatprep.mubr.f32.mxu1 %v7539_v12  ;;  %v8322_v46 = vld [vmem:[#allocation71_spill] sm:$0xff]  ;;  %v3239_v12 = vand.u32 4294901760, %v7772_v27 }
 0x215   : > { %5956 = vmatprep.subr.bf16.mxu0 %v7203_v30  ;;  %5990 = vmatpush3.bf16.msra.mxu1 %v7756_v18  ;;  %v3233_v28 = vsub.f32 %v7767_v57, %v3232_v58 }
 0x216   : > { %5216 = vmatmul.mubr.f32.gmra.mrb[24].mxu0 %v8322_v46  ;;  %5992 = vmatprep.subr.bf16.mxu1 %v5991_v61  ;;  %v8341_v46 = vld [vmem:[#allocation6_spill] sm:$0xff] }
 0x217   : > { %5390 = vmatmul.mubr.f32.gmra.mrb[12].mxu1 %v7537_v19  ;;  %5218 = vmatprep.mubr.f32.mxu0 %v8323_v43  ;;  %v3240_v19 = vsub.f32 %v7772_v27, %v3239_v12  ;;  %v3234_v22 = vand.u32 4294901760, %v3233_v28  ;;  %v8342_v43 = vld [vmem:[#allocation7_spill] sm:$0xff]  ;;  %v8344_v28 = vld [vmem:[#allocation12_spill] sm:$0xff] }
 0x218   : > { %5958 = vmatpush3.bf16.msra.mxu0 %v7203_v30  ;;  %5392 = vmatprep.mubr.f32.mxu1 %v7557_v6  ;;  %v3253_v30 = vand.u32 4294901760, %v7793_v38  ;;  %v7810_v6 = vsub.f32 %v7719_v13, %v2991_v41  ;;  %v8330_v41 = vld [vmem:[#allocation39_spill] sm:$0xff] }
 0x219   : > { %5960 = vmatprep.subr.bf16.mxu0 %v7225_v25  ;;  %v3241_v2 = vand.u32 4294901760, %v3240_v19  ;;  %v6023_v19 = vpack.c.bf16 %v7793_v38, %v7788_v17  ;;  %v8382_v17 = vld [vmem:[#allocation45_spill] sm:$0xff] }
 0x21a   : > { %5219 = vmatmul.mubr.f32.gmra.mrb[26].mxu0 %v7529_v34  ;;  %v5995_v34 = vpack.c.bf16 %v3227_v56, %v3220_v5  ;;  %v6019_v5 = vpack.c.bf16 %v7772_v27, %v7767_v57  ;;  %v8343_v56 = vld [vmem:[#allocation11_spill] sm:$0xff]  ;;  %v6063_v51 = vpack.c.bf16 %v3253_v30, %v3246_v10  ;;  %v8379_v57 = vld [vmem:[#allocation32_spill] sm:$0xff] }
 0x21b   : > { %5393 = vmatmul.mubr.f32.gmra.mrb[14].mxu1 %v7555_v37  ;;  %5221 = vmatprep.mubr.f32.mxu0 %v7553_v3  ;;  %v3254_v37 = vsub.f32 %v7793_v38, %v3253_v30  ;;  %v3260_v3 = vand.u32 4294901760, %v7810_v6  ;;  %v5999_v53 = vpack.c.bf16 %v3241_v2, %v3234_v22  ;;  %v6027_v22 = vpack.c.bf16 %v7813_v33, %v7810_v6  ;;  %v8348_v2 = vld [vmem:[#allocation34_spill] sm:$0xff]  ;;  %v8380_v27 = vld [vmem:[#allocation40_spill] sm:$0xff]  ;;  %v8385_v10 = vld [vmem:[#allocation55_spill] sm:$0xff] }
 0x21c   : > { %5962 = vmatpush3.bf16.msra.mxu0 %v7225_v25  ;;  %5415 = vmatprep.mubr.f32.mxu1 %v8324_v50  ;;  %v3267_v25 = vand.u32 4294901760, %v7813_v33  ;;  %v8345_v50 = vld [vmem:[#allocation16_spill] sm:$0xff]  ;;  %v8384_v38 = vld [vmem:[#allocation54_spill] sm:$0xff]  ;;  %v8386_v30 = vld [vmem:[#allocation63_spill] sm:$0xff] }
 0x21d   : > { %5964 = vmatprep.subr.bf16.mxu0 %v7247_v35  ;;  %v3255_v21 = vand.u32 4294901760, %v3254_v37  ;;  %v3261_v14 = vsub.f32 %v7810_v6, %v3260_v3  ;;  %v8349_v37 = vld [vmem:[#allocation37_spill] sm:$0xff]  ;;  %v8387_v6 = vld [vmem:[#allocation64_spill] sm:$0xff] }
 0x21e   : > { %5222 = vmatmul.mubr.f32.gmra.mrb[28].mxu0 %v7547_v20  ;;  %v3248_v20 = vand.u32 4294901760, %v3247_v52  ;;  %v8347_v52 = vld [vmem:[#allocation23_spill] sm:$0xff] }
 0x21f   : > { %5416 = vmatmul.mubr.f32.vlgmr.msra.gmra.mrb[16].mxu1 %v8325_v54  ;;  %5224 = vmatprep.mubr.f32.mxu0 %v7571_v23  ;;  %v3268_v23 = vsub.f32 %v7813_v33, %v3267_v25  ;;  %v3262_v39 = vand.u32 4294901760, %v3261_v14  ;;  %v8350_v54 = vld [vmem:[#allocation38_spill] sm:$0xff] }
 0x220   : > { %5966 = vmatpush3.bf16.msra.mxu0 %v7247_v35  ;;  %5994 = vmatpush3.bf16.msra.mxu1 %v5991_v61  ;;  %v8327_v35 = vld [vmem:[#allocation30_spill] sm:$0xff]  ;;  %v8338_v61 = vld [vmem:[#allocation67_spill] sm:$0xff] }
 0x221   : > { %5418 = vmatprep.mubr.f32.mxu1 %v8326_v55  ;;  %5968 = vmatprep.subr.bf16.mxu0 %v7269_v24  ;;  %v3269_v13 = vand.u32 4294901760, %v3268_v23  ;;  %v8351_v55 = vld [vmem:[#allocation43_spill] sm:$0xff]  ;;  %v8355_v14 = vld [vmem:[#allocation58_spill] sm:$0xff]  ;;  %v8356_v23 = vld [vmem:[#allocation8_spill] sm:$0xff] }
 0x222   : > { %5225 = vmatmul.mubr.f32.gmra.mrb[30].mxu0 %v7565_v47  ;;  %5996 = vmatprep.subr.bf16.mxu1 %v5995_v34  ;;  %v6003_v47 = vpack.c.bf16 %v3255_v21, %v3248_v20  ;;  %v8352_v20 = vld [vmem:[#allocation47_spill] sm:$0xff]  ;;  %v8354_v21 = vld [vmem:[#allocation56_spill] sm:$0xff] }
 0x223   : > { %5419 = vmatmul.mubr.f32.gmra.mrb[2].mxu1 %v8327_v35  ;;  %5371 = vmatprep.mubr.f32.mxu0 %v7435_v0  ;;  %v6007_v11 = vpack.c.bf16 %v3269_v13, %v3262_v39  ;;  %v8332_v0 = vld [vmem:[#allocation53_spill] sm:$0xff]  ;;  %v8360_v39 = vld [vmem:[#allocation18_spill] sm:$0xff]  ;;  %v8361_v13 = vld [vmem:[#allocation19_spill] sm:$0xff] }
 0x224   : > { %5970 = vmatpush3.bf16.msra.mxu0 %v7269_v24  ;;  %5421 = vmatprep.mubr.f32.mxu1 %v8328_v8  ;;  %v6011_v24 = vpack.c.bf16 %v7698_v1, %v7696_v7  ;;  %v8357_v35 = vld [vmem:[#allocation9_spill] sm:$0xff]  ;;  %v8358_v8 = vld [vmem:[#allocation10_spill] sm:$0xff]  ;;  %v6055_v1 = vpack.c.bf16 %v3225_v29, %v3218_v42  ;;  %v8378_v42 = vld [vmem:[#allocation31_spill] sm:$0xff]  ;;  %v6067_v29 = vpack.c.bf16 %v3267_v25, %v3260_v3 }
 0x225   : > { %5998 = vmatpush3.bf16.msra.mxu1 %v5995_v34  ;;  %v8346_v34 = vld [vmem:[#allocation22_spill] sm:$0xff]  ;;  %v8372_v7 = vld [vmem:[#allocation13_spill] sm:$0xff] }
 0x226   : > { %6000 = vmatprep.subr.bf16.mxu1 %v5999_v53 }
 0x227   : > { %5372 = vmatmul.mubr.f32.vlgmr.msra.gmra.mrb[32].mxu0 %v7431_v44  ;;  %5422 = vmatmul.mubr.f32.gmra.mrb[4].mxu1 %v8329_v26  ;;  %v8335_v44 = vld [vmem:[#allocation60_spill] sm:$0xff]  ;;  %v8362_v26 = vld [vmem:[#allocation27_spill] sm:$0xff] }
 0x228   : > { %5424 = vmatprep.mubr.f32.mxu1 %v8330_v41  ;;  %v8363_v41 = vld [vmem:[#allocation28_spill] sm:$0xff] }
 0x229   : > { %6002 = vmatpush3.bf16.msra.mxu1 %v5999_v53  ;;  %v8353_v53 = vld [vmem:[#allocation48_spill] sm:$0xff] }
 0x22a   : > { %6004 = vmatprep.subr.bf16.mxu1 %v6003_v47 }
 0x22b   : > { %5425 = vmatmul.mubr.f32.gmra.mrb[6].mxu1 %v8331_v45  ;;  %v6051_v45 = vpack.c.bf16 %v3211_v63, %v3204_v4  ;;  %v8373_v4 = vld [vmem:[#allocation14_spill] sm:$0xff]  ;;  %v8374_v63 = vld [vmem:[#allocation15_spill] sm:$0xff] }
 0x22c   : > { %5427 = vmatprep.mubr.f32.mxu1 %v8332_v0  ;;  %v8365_v0 = vld [vmem:[#allocation41_spill] sm:$0xff] }
 0x22d   : > { %6006 = vmatpush3.bf16.msra.mxu1 %v6003_v47  ;;  %v8359_v47 = vld [vmem:[#allocation17_spill] sm:$0xff] }
 0x22e   : > { %6008 = vmatprep.subr.bf16.mxu1 %v6007_v11 }
 0x22f   : > { %5428 = vmatmul.mubr.f32.gmra.mrb[8].mxu1 %v8333_v36  ;;  %v8367_v36 = vld [vmem:[#allocation46_spill] sm:$0xff] }
 0x230   : > { %5430 = vmatprep.mubr.f32.mxu1 %v8334_v16  ;;  %v8368_v16 = vld [vmem:[#allocation51_spill] sm:$0xff] }
 0x231   : > { %6010 = vmatpush3.bf16.msra.mxu1 %v6007_v11  ;;  %v8364_v11 = vld [vmem:[#allocation36_spill] sm:$0xff] }
 0x232   : > { %6012 = vmatprep.subr.bf16.mxu1 %v6011_v24 }
 0x233   : > { %5431 = vmatmul.mubr.f32.gmra.mrb[10].mxu1 %v8335_v44  ;;  %v8369_v44 = vld [vmem:[#allocation52_spill] sm:$0xff] }
 0x234   : > { %5433 = vmatprep.mubr.f32.mxu1 %v8336_v31  ;;  %v8370_v31 = vld [vmem:[#allocation61_spill] sm:$0xff] }
 0x237   : > { %5434 = vmatmul.mubr.f32.gmra.mrb[12].mxu1 %v8337_v32  ;;  %v8371_v32 = vld [vmem:[#allocation62_spill] sm:$0xff] }
 0x238   : > { %5436 = vmatprep.mubr.f32.mxu1 %v8338_v61  ;;  %v6059_v61 = vpack.c.bf16 %v3239_v12, %v3232_v58  ;;  %v8381_v58 = vld [vmem:[#allocation44_spill] sm:$0xff]  ;;  %v8383_v12 = vld [vmem:[#allocation50_spill] sm:$0xff] }
 0x23b   : > { %5437 = vmatmul.mubr.f32.gmra.mrb[14].mxu1 %v8339_v48  ;;  %v8375_v48 = vld [vmem:[#allocation20_spill] sm:$0xff] }
 0x23c   : > { %5459 = vmatprep.mubr.f32.mxu1 %v8340_v62 }
 0x23f   : > { %5460 = vmatmul.mubr.f32.vlgmr.msra.gmra.mrb[16].mxu1 %v8341_v46 }
 0x240   : > { %6014 = vmatpush3.bf16.msra.mxu1 %v6011_v24  ;;  %5462 = vmatprep.mubr.f32.mxu1 %v8342_v43  ;;  %v8366_v24 = vld [vmem:[#allocation42_spill] sm:$0xff] }
 0x241   : > { %6016 = vmatprep.subr.bf16.mxu1 %v6015_v60 }
 0x243   : > { %5463 = vmatmul.mubr.f32.gmra.mrb[2].mxu1 %v8343_v56 }
 0x244   : > { %5465 = vmatprep.mubr.f32.mxu1 %v8344_v28  ;;  %6018 = vmatpush3.bf16.msra.mxu1 %v6015_v60  ;;  %v8376_v60 = vld [vmem:[#allocation21_spill] sm:$0xff] }
 0x245   : > { %6020 = vmatprep.subr.bf16.mxu1 %v6019_v5 }
 0x247   : > { %5466 = vmatmul.mubr.f32.gmra.mrb[4].mxu1 %v8345_v50 }
 0x248   : > { %5468 = vmatprep.mubr.f32.mxu1 %v8346_v34  ;;  %6022 = vmatpush3.bf16.msra.mxu1 %v6019_v5 }
 0x249   : > { %6024 = vmatprep.subr.bf16.mxu1 %v6023_v19 }
 0x24b   : > { %5469 = vmatmul.mubr.f32.gmra.mrb[6].mxu1 %v8347_v52 }
 0x24c   : > { %5471 = vmatprep.mubr.f32.mxu1 %v8348_v2  ;;  %6026 = vmatpush3.bf16.msra.mxu1 %v6023_v19 }
 0x24d   : > { %6028 = vmatprep.subr.bf16.mxu1 %v6027_v22 }
 0x24f   : > { %5472 = vmatmul.mubr.f32.gmra.mrb[8].mxu1 %v8349_v37 }
 0x250   : > { %5474 = vmatprep.mubr.f32.mxu1 %v8350_v54  ;;  %6030 = vmatpush3.bf16.msra.mxu1 %v6027_v22 }
 0x251   : > { %6032 = vmatprep.subr.bf16.mxu1 %v7659_v59 }
 0x253   : > { %5475 = vmatmul.mubr.f32.gmra.mrb[10].mxu1 %v8351_v55 }
 0x254   : > { %5477 = vmatprep.mubr.f32.mxu1 %v8352_v20 }
 0x257   : > { %5478 = vmatmul.mubr.f32.gmra.mrb[12].mxu1 %v8353_v53 }
 0x258   : > { %5480 = vmatprep.mubr.f32.mxu1 %v8354_v21 }
 0x25b   : > { %5481 = vmatmul.mubr.f32.gmra.mrb[14].mxu1 %v8355_v14 }
 0x25c   : > { %5503 = vmatprep.mubr.f32.mxu1 %v8356_v23 }
 0x25f   : > { %5504 = vmatmul.mubr.f32.vlgmr.msra.gmra.mrb[16].mxu1 %v8357_v35 }
 0x260   : > { %6034 = vmatpush3.bf16.msra.mxu1 %v7659_v59  ;;  %5506 = vmatprep.mubr.f32.mxu1 %v8358_v8 }
 0x261   : > { %6036 = vmatprep.subr.bf16.mxu1 %v7681_v40 }
 0x263   : > { %5507 = vmatmul.mubr.f32.gmra.mrb[2].mxu1 %v8359_v47 }
 0x264   : > { %5509 = vmatprep.mubr.f32.mxu1 %v8360_v39  ;;  %6038 = vmatpush3.bf16.msra.mxu1 %v7681_v40 }
 0x265   : > { %6040 = vmatprep.subr.bf16.mxu1 %v7710_v9 }
 0x267   : > { %5510 = vmatmul.mubr.f32.gmra.mrb[4].mxu1 %v8361_v13 }
 0x268   : > { %5512 = vmatprep.mubr.f32.mxu1 %v8362_v26  ;;  %6042 = vmatpush3.bf16.msra.mxu1 %v7710_v9 }
 0x269   : > { %6044 = vmatprep.subr.bf16.mxu1 %v7730_v15 }
 0x26b   : > { %5513 = vmatmul.mubr.f32.gmra.mrb[6].mxu1 %v8363_v41 }
 0x26c   : > { %5515 = vmatprep.mubr.f32.mxu1 %v8364_v11  ;;  %6046 = vmatpush3.bf16.msra.mxu1 %v7730_v15 }
 0x26d   : > { %6048 = vmatprep.subr.bf16.mxu1 %v7756_v18 }
 0x26f   : > { %5516 = vmatmul.mubr.f32.gmra.mrb[8].mxu1 %v8365_v0 }
 0x270   : > { %5518 = vmatprep.mubr.f32.mxu1 %v8366_v24  ;;  %6050 = vmatpush3.bf16.msra.mxu1 %v7756_v18 }
 0x271   : > { %6052 = vmatprep.subr.bf16.mxu1 %v6051_v45 }
 0x273   : > { %5519 = vmatmul.mubr.f32.gmra.mrb[10].mxu1 %v8367_v36 }
 0x274   : > { %5521 = vmatprep.mubr.f32.mxu1 %v8368_v16 }
 0x277   : > { %5522 = vmatmul.mubr.f32.gmra.mrb[12].mxu1 %v8369_v44 }
 0x278   : > { %5524 = vmatprep.mubr.f32.mxu1 %v8370_v31 }
 0x27b   : > { %5525 = vmatmul.mubr.f32.gmra.mrb[14].mxu1 %v8371_v32 }
 0x27c   : > { %5547 = vmatprep.mubr.f32.mxu1 %v8372_v7 }
 0x27f   : > { %5548 = vmatmul.mubr.f32.vlgmr.msra.gmra.mrb[16].mxu1 %v8373_v4 }
 0x280   : > { %6054 = vmatpush3.bf16.msra.mxu1 %v6051_v45  ;;  %5550 = vmatprep.mubr.f32.mxu1 %v8374_v63 }
 0x281   : > { %6056 = vmatprep.subr.bf16.mxu1 %v6055_v1 }
 0x283   : > { %5551 = vmatmul.mubr.f32.gmra.mrb[2].mxu1 %v8375_v48 }
 0x284   : > { %5553 = vmatprep.mubr.f32.mxu1 %v8376_v60  ;;  %6058 = vmatpush3.bf16.msra.mxu1 %v6055_v1 }
 0x285   : > { %6060 = vmatprep.subr.bf16.mxu1 %v6059_v61 }
 0x287   : > { %5554 = vmatmul.mubr.f32.gmra.mrb[4].mxu1 %v8377_v49 }
 0x288   : > { %5556 = vmatprep.mubr.f32.mxu1 %v8378_v42  ;;  %6062 = vmatpush3.bf16.msra.mxu1 %v6059_v61 }
 0x289   : > { %6064 = vmatprep.subr.bf16.mxu1 %v6063_v51 }
 0x28b   : > { %5557 = vmatmul.mubr.f32.gmra.mrb[6].mxu1 %v8379_v57 }
 0x28c   : > { %5559 = vmatprep.mubr.f32.mxu1 %v8380_v27  ;;  %6066 = vmatpush3.bf16.msra.mxu1 %v6063_v51 }
 0x28d   : > { %6068 = vmatprep.subr.bf16.mxu1 %v6067_v29 }
 0x28f   : > { %5560 = vmatmul.mubr.f32.gmra.mrb[8].mxu1 %v8381_v58 }
 0x290   : > { %5562 = vmatprep.mubr.f32.mxu1 %v8382_v17  ;;  %6070 = vmatpush3.bf16.msra.mxu1 %v6067_v29 }
 0x291   : > { %6072 = vmatprep.subr.bf16.mxu1 %v7659_v59 }
 0x293   : > { %5563 = vmatmul.mubr.f32.gmra.mrb[10].mxu1 %v8383_v12 }
 0x294   : > { %5565 = vmatprep.mubr.f32.mxu1 %v8384_v38 }
 0x297   : > { %5566 = vmatmul.mubr.f32.gmra.mrb[12].mxu1 %v8385_v10 }
 0x298   : > { %5568 = vmatprep.mubr.f32.mxu1 %v8386_v30 }
 0x29b   : > { %5569 = vmatmul.mubr.f32.gmra.mrb[14].mxu1 %v8387_v6 }
 0x29c   : > { %5591 = vmatprep.mubr.f32.mxu1 %v8340_v62 }
 0x29f   : > { %5592 = vmatmul.mubr.f32.vlgmr.msra.gmra.mrb[16].mxu1 %v8341_v46 }
 0x2a0   : > { %6074 = vmatpush3.bf16.msra.mxu1 %v7659_v59  ;;  %5594 = vmatprep.mubr.f32.mxu1 %v8342_v43 }
 0x2a1   : > { %6076 = vmatprep.subr.bf16.mxu1 %v7681_v40 }
 0x2a3   : > { %5595 = vmatmul.mubr.f32.gmra.mrb[2].mxu1 %v8343_v56 }
 0x2a4   : > { %5597 = vmatprep.mubr.f32.mxu1 %v8344_v28  ;;  %6078 = vmatpush3.bf16.msra.mxu1 %v7681_v40 }
 0x2a5   : > { %6080 = vmatprep.subr.bf16.mxu1 %v7710_v9 }
 0x2a7   : > { %5598 = vmatmul.mubr.f32.gmra.mrb[4].mxu1 %v8345_v50 }
 0x2a8   : > { %5600 = vmatprep.mubr.f32.mxu1 %v8346_v34  ;;  %6082 = vmatpush3.bf16.msra.mxu1 %v7710_v9 }
 0x2a9   : > { %6084 = vmatprep.subr.bf16.mxu1 %v7730_v15 }
 0x2ab   : > { %5601 = vmatmul.mubr.f32.gmra.mrb[6].mxu1 %v8347_v52 }
 0x2ac   : > { %5603 = vmatprep.mubr.f32.mxu1 %v8348_v2  ;;  %6086 = vmatpush3.bf16.msra.mxu1 %v7730_v15 }
 0x2ad   : > { %6088 = vmatprep.subr.bf16.mxu1 %v7756_v18 }
 0x2af   : > { %5604 = vmatmul.mubr.f32.gmra.mrb[8].mxu1 %v8349_v37 }
 0x2b0   : > { %5606 = vmatprep.mubr.f32.mxu1 %v8350_v54  ;;  %6090 = vmatpush3.bf16.msra.mxu1 %v7756_v18 }
 0x2b3   : > { %5607 = vmatmul.mubr.f32.gmra.mrb[10].mxu1 %v8351_v55 }
 0x2b4   : > { %5609 = vmatprep.mubr.f32.mxu1 %v8352_v20 }
 0x2b5   : > { %v5317_v59 = vpop.f32.mrb[0].mxu1 }
 0x2b6   : > { %v2695_v40 = vpop.f32.mrb[1].mxu1 }
 0x2b7   : > { %5610 = vmatmul.mubr.f32.gmra.mrb[12].mxu1 %v8353_v53 }
 0x2b8   : > { %5612 = vmatprep.mubr.f32.mxu1 %v8354_v21 }
 0x2bb   : > { %5613 = vmatmul.mubr.f32.gmra.mrb[14].mxu1 %v8355_v14 }
 0x2bc   : > { %5635 = vmatprep.mubr.f32.mxu1 %v8340_v62 }
 0x2bf   : > { %5636 = vmatmul.mubr.f32.vlgmr.msra.gmra.mrb[16].mxu1 %v8341_v46 }
 0x2c0   : > { %5638 = vmatprep.mubr.f32.mxu1 %v8342_v43 }
 0x2c3   : > { %5639 = vmatmul.mubr.f32.gmra.mrb[2].mxu1 %v8343_v56 }
 0x2c4   : > { %5641 = vmatprep.mubr.f32.mxu1 %v8344_v28 }
 0x2c7   : > { %5642 = vmatmul.mubr.f32.gmra.mrb[4].mxu1 %v8345_v50 }
 0x2c8   : > { %5644 = vmatprep.mubr.f32.mxu1 %v8346_v34 }
 0x2cb   : > { %5645 = vmatmul.mubr.f32.gmra.mrb[6].mxu1 %v8347_v52 }
 0x2cc   : > { %5647 = vmatprep.mubr.f32.mxu1 %v8348_v2 }
 0x2cf   : > { %5648 = vmatmul.mubr.f32.gmra.mrb[8].mxu1 %v8349_v37 }
 0x2d0   : > { %5650 = vmatprep.mubr.f32.mxu1 %v8350_v54 }
 0x2d3   : > { %5651 = vmatmul.mubr.f32.gmra.mrb[10].mxu1 %v8351_v55 }
 0x2d4   : > { %5653 = vmatprep.mubr.f32.mxu1 %v8352_v20 }
 0x2d7   : > { %5654 = vmatmul.mubr.f32.gmra.mrb[12].mxu1 %v8353_v53 }
 0x2d8   : > { %5656 = vmatprep.mubr.f32.mxu1 %v8354_v21 }
 0x2d9   : > { %v5205_v9 = vpop.f32.mrb[16].mxu0 }
 0x2da   : > { %v6107_v15 = vadd.f32 %v5317_v59, %v5205_v9  ;;  %v2262_v18 = vpop.f32.mrb[17].mxu0 }
 0x2db   : > { %v6110_v33 = vadd.f32 %v2695_v40, %v2262_v18  ;;  %5657 = vmatmul.mubr.f32.gmra.mrb[14].mxu1 %v8355_v14 }
 0x2dd   : > { %v5208_v3 = vpop.f32.mrb[18].mxu0 }
 0x2de   : > { %v2276_v25 = vpop.f32.mrb[19].mxu0 }
 0x2e1   : > { %v5211_v62 = vpop.f32.mrb[20].mxu0 }
 0x2e2   : > { %v2290_v46 = vpop.f32.mrb[21].mxu0 }
 0x2e5   : > { %v5214_v43 = vpop.f32.mrb[22].mxu0 }
 0x2e6   : > { %v2304_v5 = vpop.f32.mrb[23].mxu0 }
 0x2e9   : > { %v5217_v56 = vpop.f32.mrb[24].mxu0 }
 0x2ea   : > { %v2318_v28 = vpop.f32.mrb[25].mxu0 }
 0x2ed   : > { %v5220_v19 = vpop.f32.mrb[26].mxu0 }
 0x2ee   : > { %v2332_v50 = vpop.f32.mrb[27].mxu0 }
 0x2f1   : > { %v5223_v34 = vpop.f32.mrb[28].mxu0 }
 0x2f2   : > { %v2346_v22 = vpop.f32.mrb[29].mxu0 }
 0x2f5   : > { %v5226_v52 = vpop.f32.mrb[30].mxu0 }
 0x2f6   : > { %v2360_v2 = vpop.f32.mrb[31].mxu0 }
 0x2fa   : > { %v5373_v37 = vpop.f32.mrb[32].mxu0 }
 0x2fb   : > { %v6108_v54 = vadd.f32 %v6107_v15, %v5373_v37  ;;  %v2872_v55 = vpop.f32.mrb[33].mxu0 }
 0x2fc   : > { %v6111_v20 = vadd.f32 %v6110_v33, %v2872_v55 }
 0x392   : > { %v5637_v53 = vpop.f32.mrb[16].mxu1 }
 0x393   : > { %v6109_v21 = vadd.f32 %v6108_v54, %v5637_v53  ;;  %v4080_v14 = vpop.f32.mrb[17].mxu1 }
 0x394   : > { %v6112_v23 = vadd.f32 %v6111_v20, %v4080_v14 }
 0x395   : > { %4175 = vst [vmem:[%s7990_s29 + $0x8] sm:$0xff] %v6109_v21 }
 0x396   : > { %4174 = vst [vmem:[%s7990_s29] sm:$0xff] %v6112_v23  ;;  %v5640_v35 = vpop.f32.mrb[2].mxu1 }
 0x397   : > { %v6113_v8 = vadd.f32 %v5640_v35, %v5208_v3  ;;  %v4092_v47 = vpop.f32.mrb[3].mxu1 }
 0x398   : > { %v6114_v39 = vadd.f32 %v4092_v47, %v2276_v25 }
 0x399   : > { %4177 = vst [vmem:[%s7990_s29 + $0x18] sm:$0xff] %v6113_v8 }
 0x39a   : > { %4176 = vst [vmem:[%s7990_s29 + $0x10] sm:$0xff] %v6114_v39  ;;  %v5643_v13 = vpop.f32.mrb[4].mxu1 }
 0x39b   : > { %v6115_v26 = vadd.f32 %v5643_v13, %v5211_v62  ;;  %v4104_v41 = vpop.f32.mrb[5].mxu1 }
 0x39c   : > { %v6116_v11 = vadd.f32 %v4104_v41, %v2290_v46 }
 0x39d   : > { %4179 = vst [vmem:[%s7990_s29 + $0x28] sm:$0xff] %v6115_v26 }
 0x39e   : > { %4178 = vst [vmem:[%s7990_s29 + $0x20] sm:$0xff] %v6116_v11  ;;  %v5646_v45 = vpop.f32.mrb[6].mxu1 }
 0x39f   : > { %v6117_v0 = vadd.f32 %v5646_v45, %v5214_v43  ;;  %v4116_v24 = vpop.f32.mrb[7].mxu1 }
 0x3a0   : > { %v6118_v36 = vadd.f32 %v4116_v24, %v2304_v5 }
 0x3a1   : > { %4181 = vst [vmem:[%s7990_s29 + $0x38] sm:$0xff] %v6117_v0 }
 0x3a2   : > { %4180 = vst [vmem:[%s7990_s29 + $0x30] sm:$0xff] %v6118_v36  ;;  %v5649_v16 = vpop.f32.mrb[8].mxu1 }
 0x3a3   : > { %v6119_v44 = vadd.f32 %v5649_v16, %v5217_v56  ;;  %v4128_v31 = vpop.f32.mrb[9].mxu1 }
 0x3a4   : > { %v6120_v32 = vadd.f32 %v4128_v31, %v2318_v28 }
 0x3a5   : > { %4183 = vst [vmem:[%s7990_s29 + $0x48] sm:$0xff] %v6119_v44 }
 0x3a6   : > { %4182 = vst [vmem:[%s7990_s29 + $0x40] sm:$0xff] %v6120_v32  ;;  %v5652_v7 = vpop.f32.mrb[10].mxu1 }
 0x3a7   : > { %v6121_v1 = vadd.f32 %v5652_v7, %v5220_v19  ;;  %v4140_v4 = vpop.f32.mrb[11].mxu1 }
 0x3a8   : > { %v6122_v63 = vadd.f32 %v4140_v4, %v2332_v50 }
 0x3a9   : > { %4185 = vst [vmem:[%s7990_s29 + $0x58] sm:$0xff] %v6121_v1 }
 0x3aa   : > { %4184 = vst [vmem:[%s7990_s29 + $0x50] sm:$0xff] %v6122_v63  ;;  %v5655_v61 = vpop.f32.mrb[12].mxu1 }
 0x3ab   : > { %v6123_v48 = vadd.f32 %v5655_v61, %v5223_v34  ;;  %v4152_v60 = vpop.f32.mrb[13].mxu1 }
 0x3ac   : > { %v6124_v51 = vadd.f32 %v4152_v60, %v2346_v22  ;;  %4197 = sbr.rel (!%p6575_p5) target bundleno = 975 (0x3cf), region = 48 }
 0x3ad   : > { %4187 = vst [vmem:[%s7990_s29 + $0x68] sm:$0xff] %v6123_v48 }
 0x3ae   : > { %4186 = vst [vmem:[%s7990_s29 + $0x60] sm:$0xff] %v6124_v51  ;;  %v5658_v49 = vpop.f32.mrb[14].mxu1 }
 0x3af   : > { %v6125_v42 = vadd.f32 %v5658_v49, %v5226_v52  ;;  %v4164_v29 = vpop.f32.mrb[15].mxu1 }
 0x3b0   : > { %v6126_v57 = vadd.f32 %v4164_v29, %v2360_v2 }
 0x3b1   : > { %4189 = vst [vmem:[%s7990_s29 + $0x78] sm:$0xff] %v6125_v42 }
 0x3b2   : > { %4188 = vst [vmem:[%s7990_s29 + $0x70] sm:$0xff] %v6126_v57 }
 0x3b3   : > { %s8393_s10 = smov (!%p4200_p11, %s4199_s10), 16 }
 0x3b4   : > { %s8015_s11 = sshll.u32 %s8393_s10, 7 }
 0x3b5   : > { %s4204_s12 = ssub.s32 2048, %s8015_s11 }
 0x3b6   : > { %4205 = vsyncadd %s8010_s9, %s4204_s12  ;;  %p4284_p12 = scmp.ne.s32.totalorder %s8015_s11, 0  ;;  %s4290_s13 = sshll.u32 %s6558_s25, 11 }
 0x3b7   : > { %s8024_s16 = scalar_lea.hbm %s8077_s6, %s4290_s13  ;;  %s4210_s15 = sshll.u32 %s7990_s29, 4  ;;  %s8027_s15 = int_to_ptr.vmem [resolvable:$true] %s4210_s15 }
 0x3b8   : > { %s6435_s17 = scalar_lea.vmem %s8027_s15, %s8015_s11  ;;  %s6499_s18 = smov [#allocation2]  }
 0x3b9   : > { %p6436_p13 = scmp.ne.s32.totalorder %s8027_s15, %s6435_s17  ;;  %s6439_s19 = sshll.u32 %s6499_s18, 4  ;;  %s6440_s19 = int_to_ptr.vmem [resolvable:$false] %s6439_s19 }
 0x3ba   : > { %s6441_s25 = scalar_lea.vmem %s6440_s19, 4096  ;;  %p6442_p2 = scmp.lt.s32.totalorder %s8027_s15, %s6440_s19 }
 0x3bb   : > { %p6437_p0 = pnand %p6436_p13, %p4284_p12  ;;  %p6443_p3 = scmp.lt.s32.totalorder %s6441_s25, %s6435_s17 }
 0x3bd   : > { %p6438_p1 = pneg %p6437_p0  ;;  %p6444_p4 = por %p6443_p3, %p6442_p2 }
 0x3bf   : > { %p6445_p5 = pnand %p6444_p4, %p6438_p1 }
 0x3c1   : > { %6448 = shalt.err (!%p6445_p5)
}
 0x3c2   : > { %s6449_s20 = scalar_lea.hbm %s8024_s16, %s8015_s11  ;;  %s6453_s29 = scalar_lea.hbm %s8077_s6, 3072 }
 0x3c3   : > { %p6450_p7 = scmp.ne.s32.totalorder %s8024_s16, %s6449_s20  ;;  %p6454_p10 = scmp.lt.u32.totalorder %s8024_s16, %s8077_s6 }
 0x3c4   : > { %p6455_p11 = scmp.lt.u32.totalorder %s6453_s29, %s6449_s20  ;;  %p6457_p0 = scmp.lt.u32.totalorder %s6449_s20, %s8024_s16 }
 0x3c5   : > { %p6451_p8 = pnand %p6450_p7, %p4284_p12 }
 0x3c6   : > { %p6456_p13 = por %p6455_p11, %p6454_p10 }
 0x3c7   : > { %p6452_p9 = pneg %p6451_p8 }
 0x3c8   : > { %p6458_p1 = por %p6457_p0, %p6456_p13 }
 0x3ca   : > { %p6459_p2 = pnand %p6458_p1, %p6452_p9 }
 0x3cc   : > { %6462 = shalt.err (!%p6459_p2)
}
 0x3cd   : > { %s6500_s13 = smov 128   ;;  %s6501_s14 = smov 8  }
 0x3ce   : > { %4216 = dma.vmem_to_hbm [thread:$0]  (%p4284_p12), %s8027_s15, %s8015_s11, %s8024_s16, %s8010_s9, %s6500_s13, %s6500_s13, %s6501_s14  }
 0x3cf PF: > { %p6368_p3 = scmp.ge.s32.totalorder %s6497_s24, 2  ;;  %s4225_s7 = sand.u32 1, %s6485_s21  }
 0x3d0   : > { %s4226_s17 = scalar_lea.sflag [#allocation3], %s4225_s7 }
 0x3d1   : > { %p6365_p4 = pnand %p6368_p3, %p6579_p6 }
 0x3d3   : > { %6480 = dma.done.wait (!%p6365_p4), %s4226_s17, 2048  }
 0x3d4   : > { %6482 = vsyncadd (!%p6365_p4), %s4226_s17, 4294965248  ;;  %p16_p5 = scmp.ge.s32.totalorder %s6562_s27, 4   ;;  %s8388_s21 = smov %s6489_s22 }
 0x3d5   : > { %s8389_s22 = smov %s6493_s23  ;;  %s8390_s23 = smov %s6573_s30 }
 0x3d6   : > { %s8391_s24 = smov %s6562_s27  ;;  %18 = sbr.rel (!%p16_p5) target bundleno = 3 (0x3), region = 79 }
 0x3dd   :  { %4231 = vsyncpa [#allocation3], 1 }
 0x3de   :  { %4233 = vsyncpa [#allocation3 + $0x1], 1 }

</bundles_post_ra>
